<compile_context>
chip_gen: v7x
topology: tpu7x:2x2x1
jax: 0.10.0
libtpu: 0.0.40
codegen_flags: <defaults>
</compile_context>

<pallas_src>
import functools

import jax
import jax.numpy as jnp
from jax import lax
from jax.experimental import pallas as pl
from jax.experimental.pallas import tpu as pltpu


def lstm_kernel(x_ref, wih_ref, whh_ref, b_ref, wl_ref, bl_ref, out_ref,
                *, S, BP, HP):
    # One-shot input projection for every timestep, kept as a traced value
    # (no VMEM scratch store/reload): (S*BP, I) @ (I, 4*HP) + (1, 4*HP).
    zx = (jnp.dot(x_ref[...], wih_ref[...], preferred_element_type=jnp.float32)
          + b_ref[...])

    whh = whh_ref[...]                                   # loop-invariant RHS
    h = jnp.zeros((BP, HP), jnp.float32)
    c = jnp.zeros((BP, HP), jnp.float32)

    # Static Python unroll over the (short) sequence -> static row slices of
    # zx and a fully visible serial chain for the scheduler.
    for t in range(S):
        z = zx[t * BP:(t + 1) * BP, :] + jnp.dot(
            h, whh, preferred_element_type=jnp.float32)   # (BP, 4*HP)
        # Gates packed [i | f | o | g]; one sigmoid launch covers i,f,o.
        sig = jax.nn.sigmoid(z[:, :3 * HP])
        i_g = sig[:, 0 * HP:1 * HP]
        f_g = sig[:, 1 * HP:2 * HP]
        o_g = sig[:, 2 * HP:3 * HP]
        g_g = jnp.tanh(z[:, 3 * HP:4 * HP])
        c = f_g * c + i_g * g_g
        h = o_g * jnp.tanh(c)

    # Final linear head on the VPU: multiply + lane reduce (avoids an N=1 MXU
    # pass). Padded lanes of wl are zero, so padded h lanes cannot leak.
    out_ref[...] = (jnp.sum(h * wl_ref[...], axis=-1, keepdims=True)
                    + bl_ref[...]).astype(out_ref.dtype)


def lstm_model_forward(x_bsi, params):
    """x_bsi: (batch, seq, input) float32.  Returns (batch, 1) float32."""
    w_ih, w_hh, b_ih, b_hh, w_lin, b_lin = params
    B, S, I = x_bsi.shape
    H = w_hh.shape[1]
    HP = ((H + 127) // 128) * 128        # lane-pad each gate to full 128-lane tiles
    BP = ((B + 7) // 8) * 8              # sublane-pad batch (f32 granule = 8)

    # ---- layout plumbing in plain JAX (outside the kernel) ----
    x_sbi = jnp.transpose(x_bsi, (1, 0, 2))                       # (S, B, I)
    x_pad = jnp.pad(x_sbi, ((0, 0), (0, BP - B), (0, 0)))         # (S, BP, I)
    x2 = x_pad.reshape(S * BP, I)                                 # (S*BP, I)

    # PyTorch gate order is [i, f, g, o]; repack to [i, f, o, g] so the three
    # sigmoid gates are contiguous.  Pad each gate's H columns to HP; padded
    # rows/columns of W_hh and padded lanes of W_lin are ZERO (required for
    # pad-lane isolation correctness).
    gperm = (0, 1, 3, 2)
    wih_g = w_ih.T.reshape(I, 4, H)[:, gperm, :]
    wih_pad = jnp.pad(wih_g, ((0, 0), (0, 0), (0, HP - H))).reshape(I, 4 * HP)
    whh_g = w_hh.T.reshape(H, 4, H)[:, gperm, :]
    whh_pad = jnp.pad(whh_g, ((0, HP - H), (0, 0), (0, HP - H))).reshape(HP, 4 * HP)
    b_g = (b_ih + b_hh).reshape(4, H)[gperm, :]
    b_pad = jnp.pad(b_g, ((0, 0), (0, HP - H))).reshape(1, 4 * HP)
    wl_pad = jnp.pad(w_lin.reshape(1, H), ((0, 0), (0, HP - H)))  # (1, HP)
    bl2 = b_lin.reshape(1, 1)                                     # (1, 1)

    kernel = functools.partial(lstm_kernel, S=S, BP=BP, HP=HP)

    out = pl.pallas_call(
        kernel,
        out_shape=jax.ShapeDtypeStruct((BP, 1), jnp.float32),
        grid_spec=pltpu.PrefetchScalarGridSpec(
            num_scalar_prefetch=0,
            grid=(1,),
            in_specs=[
                pl.BlockSpec((S * BP, I), lambda i: (0, 0)),      # X (flattened)
                pl.BlockSpec((I, 4 * HP), lambda i: (0, 0)),      # W_ih^T (padded, [i,f,o,g])
                pl.BlockSpec((HP, 4 * HP), lambda i: (0, 0)),     # W_hh^T (padded, [i,f,o,g])
                pl.BlockSpec((1, 4 * HP), lambda i: (0, 0)),      # bias (padded, [i,f,o,g])
                pl.BlockSpec((1, HP), lambda i: (0, 0)),          # W_lin (padded)
                pl.BlockSpec((1, 1), lambda i: (0, 0)),           # b_lin
            ],
            out_specs=pl.BlockSpec((BP, 1), lambda i: (0, 0)),
        ),
        compiler_params=pltpu.CompilerParams(
            dimension_semantics=("arbitrary",)),
    )(x2, wih_pad, whh_pad, b_pad, wl_pad, bl2)
    return out[:B]


def lstm_model_reference(x_bsi, params):
    """Pure-JAX reference (PyTorch LSTM semantics) for verification."""
    w_ih, w_hh, b_ih, b_hh, w_lin, b_lin = params
    B, S, I = x_bsi.shape
    H = w_hh.shape[1]
    h0 = jnp.zeros((B, H), jnp.float32)
    c0 = jnp.zeros((B, H), jnp.float32)

    def step(carry, x_t):
        h, c = carry
        z = x_t @ w_ih.T + b_ih + h @ w_hh.T + b_hh
        i = jax.nn.sigmoid(z[:, 0 * H:1 * H])
        f = jax.nn.sigmoid(z[:, 1 * H:2 * H])
        g = jnp.tanh(z[:, 2 * H:3 * H])
        o = jax.nn.sigmoid(z[:, 3 * H:4 * H])
        c_new = f * c + i * g
        h_new = o * jnp.tanh(c_new)
        return (h_new, c_new), None

    (h_last, _), _ = lax.scan(step, (h0, c0), jnp.transpose(x_bsi, (1, 0, 2)))
    return h_last @ w_lin.T + b_lin


def init_params(key, input_size=4, hidden_size=64):
    """Deterministic PyTorch-style init: U(-1/sqrt(H), 1/sqrt(H))."""
    H, I = hidden_size, input_size
    k = 1.0 / jnp.sqrt(jnp.float32(H))
    ks = jax.random.split(key, 6)
    w_ih = jax.random.uniform(ks[0], (4 * H, I), jnp.float32, -k, k)
    w_hh = jax.random.uniform(ks[1], (4 * H, H), jnp.float32, -k, k)
    b_ih = jax.random.uniform(ks[2], (4 * H,), jnp.float32, -k, k)
    b_hh = jax.random.uniform(ks[3], (4 * H,), jnp.float32, -k, k)
    w_lin = jax.random.uniform(ks[4], (1, H), jnp.float32, -k, k)
    b_lin = jax.random.uniform(ks[5], (1,), jnp.float32, -k, k)
    return (w_ih, w_hh, b_ih, b_hh, w_lin, b_lin)


if __name__ == "__main__":
    key = jax.random.PRNGKey(0)
    k_param, k_x = jax.random.split(key)

    B, S, I, H = 2, 8, 4, 64
    params = init_params(k_param, input_size=I, hidden_size=H)
    x = jax.random.normal(k_x, (B, S, I), jnp.float32)

    out = lstm_model_forward(x, params)
    out = jax.block_until_ready(out)

    ref = lstm_model_reference(x, params)
    assert out.shape == (B, 1), out.shape
    assert jnp.allclose(out, ref, atol=1e-5, rtol=1e-5), (out, ref)

    print("KERNEL_OK")
</pallas_src>

<mosaic_0001>
module attributes {stable_mosaic.version = 11 : i64} {
  func.func @lstm_kernel(%arg0: i32, %arg1: memref<64x4xf32, #tpu.memory_space<vmem>>, %arg2: memref<4x512xf32, #tpu.memory_space<vmem>>, %arg3: memref<128x512xf32, #tpu.memory_space<vmem>>, %arg4: memref<1x512xf32, #tpu.memory_space<vmem>>, %arg5: memref<1x128xf32, #tpu.memory_space<vmem>>, %arg6: memref<1x1xf32, #tpu.memory_space<vmem>>, %arg7: memref<8x1xf32, #tpu.memory_space<vmem>>) attributes {dimension_semantics = [#tpu.dimension_semantics<arbitrary>], iteration_bounds = array<i64: 1>, scalar_prefetch = 0 : i64, scratch_operands = 0 : i64, tpu.core_type = #tpu.core_type<tc>, window_params = [{pipeline_mode = #tpu.pipeline_mode<synchronous>, transform_indices = @transform_0, window_bounds = array<i64: 64, 4>}, {pipeline_mode = #tpu.pipeline_mode<synchronous>, transform_indices = @transform_1, window_bounds = array<i64: 4, 512>}, {pipeline_mode = #tpu.pipeline_mode<synchronous>, transform_indices = @transform_2, window_bounds = array<i64: 128, 512>}, {pipeline_mode = #tpu.pipeline_mode<synchronous>, transform_indices = @transform_3, window_bounds = array<i64: 1, 512>}, {pipeline_mode = #tpu.pipeline_mode<synchronous>, transform_indices = @transform_4, window_bounds = array<i64: 1, 128>}, {pipeline_mode = #tpu.pipeline_mode<synchronous>, transform_indices = @transform_5, window_bounds = array<i64: 1, 1>}, {pipeline_mode = #tpu.pipeline_mode<synchronous>, transform_indices = @transform_6, window_bounds = array<i64: 8, 1>}]} {
    %c0 = arith.constant 0 : index
    %c0_0 = arith.constant 0 : index
    %0 = vector.load %arg1[%c0, %c0_0] : memref<64x4xf32, #tpu.memory_space<vmem>>, vector<64x4xf32>
    %c0_1 = arith.constant 0 : index
    %c0_2 = arith.constant 0 : index
    %1 = vector.load %arg2[%c0_1, %c0_2] : memref<4x512xf32, #tpu.memory_space<vmem>>, vector<4x512xf32>
    %cst = arith.constant dense<0.000000e+00> : vector<64x512xf32>
    %2 = tpu.matmul %0, %1, %cst {dimension_numbers = #tpu.dot_dimension_numbers<[1], [0], [0], [1], [0, 0, 1, 1], [], []>} : vector<64x4xf32>, vector<4x512xf32>, vector<64x512xf32> -> vector<64x512xf32>
    %c0_3 = arith.constant 0 : index
    %c0_4 = arith.constant 0 : index
    %3 = vector.load %arg4[%c0_3, %c0_4] : memref<1x512xf32, #tpu.memory_space<vmem>>, vector<1x512xf32>
    %4 = vector.broadcast %3 : vector<1x512xf32> to vector<64x512xf32>
    %5 = arith.addf %2, %4 : vector<64x512xf32>
    %c0_5 = arith.constant 0 : index
    %c0_6 = arith.constant 0 : index
    %6 = vector.load %arg3[%c0_5, %c0_6] : memref<128x512xf32, #tpu.memory_space<vmem>>, vector<128x512xf32>
    %cst_7 = arith.constant 0.000000e+00 : f32
    %7 = vector.broadcast %cst_7 : f32 to vector<8x128xf32>
    %cst_8 = arith.constant 0.000000e+00 : f32
    %8 = vector.broadcast %cst_8 : f32 to vector<8x128xf32>
    %9 = vector.extract_strided_slice %5 {offsets = [0, 0], sizes = [8, 512], strides = [1, 1]} : vector<64x512xf32> to vector<8x512xf32>
    %cst_9 = arith.constant dense<0.000000e+00> : vector<8x512xf32>
    %10 = tpu.matmul %7, %6, %cst_9 {dimension_numbers = #tpu.dot_dimension_numbers<[1], [0], [0], [1], [0, 0, 1, 1], [], []>} : vector<8x128xf32>, vector<128x512xf32>, vector<8x512xf32> -> vector<8x512xf32>
    %11 = arith.addf %9, %10 : vector<8x512xf32>
    %12 = vector.extract_strided_slice %11 {offsets = [0, 0], sizes = [8, 384], strides = [1, 1]} : vector<8x512xf32> to vector<8x384xf32>
    %13 = arith.negf %12 : vector<8x384xf32>
    %14 = math.exp %13 : vector<8x384xf32>
    %cst_10 = arith.constant 1.000000e+00 : f32
    %15 = vector.broadcast %cst_10 : f32 to vector<8x384xf32>
    %16 = arith.addf %15, %14 : vector<8x384xf32>
    %17 = arith.divf %15, %16 : vector<8x384xf32>
    %18 = vector.extract_strided_slice %17 {offsets = [0, 0], sizes = [8, 128], strides = [1, 1]} : vector<8x384xf32> to vector<8x128xf32>
    %19 = vector.extract_strided_slice %17 {offsets = [0, 128], sizes = [8, 128], strides = [1, 1]} : vector<8x384xf32> to vector<8x128xf32>
    %20 = vector.extract_strided_slice %17 {offsets = [0, 256], sizes = [8, 128], strides = [1, 1]} : vector<8x384xf32> to vector<8x128xf32>
    %21 = vector.extract_strided_slice %11 {offsets = [0, 384], sizes = [8, 128], strides = [1, 1]} : vector<8x512xf32> to vector<8x128xf32>
    %22 = math.tanh %21 : vector<8x128xf32>
    %23 = arith.mulf %19, %8 : vector<8x128xf32>
    %24 = arith.mulf %18, %22 : vector<8x128xf32>
    %25 = arith.addf %23, %24 : vector<8x128xf32>
    %26 = math.tanh %25 : vector<8x128xf32>
    %27 = arith.mulf %20, %26 : vector<8x128xf32>
    %28 = vector.extract_strided_slice %5 {offsets = [8, 0], sizes = [8, 512], strides = [1, 1]} : vector<64x512xf32> to vector<8x512xf32>
    %cst_11 = arith.constant dense<0.000000e+00> : vector<8x512xf32>
    %29 = tpu.matmul %27, %6, %cst_11 {dimension_numbers = #tpu.dot_dimension_numbers<[1], [0], [0], [1], [0, 0, 1, 1], [], []>} : vector<8x128xf32>, vector<128x512xf32>, vector<8x512xf32> -> vector<8x512xf32>
    %30 = arith.addf %28, %29 : vector<8x512xf32>
    %31 = vector.extract_strided_slice %30 {offsets = [0, 0], sizes = [8, 384], strides = [1, 1]} : vector<8x512xf32> to vector<8x384xf32>
    %32 = arith.negf %31 : vector<8x384xf32>
    %33 = math.exp %32 : vector<8x384xf32>
    %cst_12 = arith.constant 1.000000e+00 : f32
    %34 = vector.broadcast %cst_12 : f32 to vector<8x384xf32>
    %35 = arith.addf %34, %33 : vector<8x384xf32>
    %36 = arith.divf %34, %35 : vector<8x384xf32>
    %37 = vector.extract_strided_slice %36 {offsets = [0, 0], sizes = [8, 128], strides = [1, 1]} : vector<8x384xf32> to vector<8x128xf32>
    %38 = vector.extract_strided_slice %36 {offsets = [0, 128], sizes = [8, 128], strides = [1, 1]} : vector<8x384xf32> to vector<8x128xf32>
    %39 = vector.extract_strided_slice %36 {offsets = [0, 256], sizes = [8, 128], strides = [1, 1]} : vector<8x384xf32> to vector<8x128xf32>
    %40 = vector.extract_strided_slice %30 {offsets = [0, 384], sizes = [8, 128], strides = [1, 1]} : vector<8x512xf32> to vector<8x128xf32>
    %41 = math.tanh %40 : vector<8x128xf32>
    %42 = arith.mulf %38, %25 : vector<8x128xf32>
    %43 = arith.mulf %37, %41 : vector<8x128xf32>
    %44 = arith.addf %42, %43 : vector<8x128xf32>
    %45 = math.tanh %44 : vector<8x128xf32>
    %46 = arith.mulf %39, %45 : vector<8x128xf32>
    %47 = vector.extract_strided_slice %5 {offsets = [16, 0], sizes = [8, 512], strides = [1, 1]} : vector<64x512xf32> to vector<8x512xf32>
    %cst_13 = arith.constant dense<0.000000e+00> : vector<8x512xf32>
    %48 = tpu.matmul %46, %6, %cst_13 {dimension_numbers = #tpu.dot_dimension_numbers<[1], [0], [0], [1], [0, 0, 1, 1], [], []>} : vector<8x128xf32>, vector<128x512xf32>, vector<8x512xf32> -> vector<8x512xf32>
    %49 = arith.addf %47, %48 : vector<8x512xf32>
    %50 = vector.extract_strided_slice %49 {offsets = [0, 0], sizes = [8, 384], strides = [1, 1]} : vector<8x512xf32> to vector<8x384xf32>
    %51 = arith.negf %50 : vector<8x384xf32>
    %52 = math.exp %51 : vector<8x384xf32>
    %cst_14 = arith.constant 1.000000e+00 : f32
    %53 = vector.broadcast %cst_14 : f32 to vector<8x384xf32>
    %54 = arith.addf %53, %52 : vector<8x384xf32>
    %55 = arith.divf %53, %54 : vector<8x384xf32>
    %56 = vector.extract_strided_slice %55 {offsets = [0, 0], sizes = [8, 128], strides = [1, 1]} : vector<8x384xf32> to vector<8x128xf32>
    %57 = vector.extract_strided_slice %55 {offsets = [0, 128], sizes = [8, 128], strides = [1, 1]} : vector<8x384xf32> to vector<8x128xf32>
    %58 = vector.extract_strided_slice %55 {offsets = [0, 256], sizes = [8, 128], strides = [1, 1]} : vector<8x384xf32> to vector<8x128xf32>
    %59 = vector.extract_strided_slice %49 {offsets = [0, 384], sizes = [8, 128], strides = [1, 1]} : vector<8x512xf32> to vector<8x128xf32>
    %60 = math.tanh %59 : vector<8x128xf32>
    %61 = arith.mulf %57, %44 : vector<8x128xf32>
    %62 = arith.mulf %56, %60 : vector<8x128xf32>
    %63 = arith.addf %61, %62 : vector<8x128xf32>
    %64 = math.tanh %63 : vector<8x128xf32>
    %65 = arith.mulf %58, %64 : vector<8x128xf32>
    %66 = vector.extract_strided_slice %5 {offsets = [24, 0], sizes = [8, 512], strides = [1, 1]} : vector<64x512xf32> to vector<8x512xf32>
    %cst_15 = arith.constant dense<0.000000e+00> : vector<8x512xf32>
    %67 = tpu.matmul %65, %6, %cst_15 {dimension_numbers = #tpu.dot_dimension_numbers<[1], [0], [0], [1], [0, 0, 1, 1], [], []>} : vector<8x128xf32>, vector<128x512xf32>, vector<8x512xf32> -> vector<8x512xf32>
    %68 = arith.addf %66, %67 : vector<8x512xf32>
    %69 = vector.extract_strided_slice %68 {offsets = [0, 0], sizes = [8, 384], strides = [1, 1]} : vector<8x512xf32> to vector<8x384xf32>
    %70 = arith.negf %69 : vector<8x384xf32>
    %71 = math.exp %70 : vector<8x384xf32>
    %cst_16 = arith.constant 1.000000e+00 : f32
    %72 = vector.broadcast %cst_16 : f32 to vector<8x384xf32>
    %73 = arith.addf %72, %71 : vector<8x384xf32>
    %74 = arith.divf %72, %73 : vector<8x384xf32>
    %75 = vector.extract_strided_slice %74 {offsets = [0, 0], sizes = [8, 128], strides = [1, 1]} : vector<8x384xf32> to vector<8x128xf32>
    %76 = vector.extract_strided_slice %74 {offsets = [0, 128], sizes = [8, 128], strides = [1, 1]} : vector<8x384xf32> to vector<8x128xf32>
    %77 = vector.extract_strided_slice %74 {offsets = [0, 256], sizes = [8, 128], strides = [1, 1]} : vector<8x384xf32> to vector<8x128xf32>
    %78 = vector.extract_strided_slice %68 {offsets = [0, 384], sizes = [8, 128], strides = [1, 1]} : vector<8x512xf32> to vector<8x128xf32>
    %79 = math.tanh %78 : vector<8x128xf32>
    %80 = arith.mulf %76, %63 : vector<8x128xf32>
    %81 = arith.mulf %75, %79 : vector<8x128xf32>
    %82 = arith.addf %80, %81 : vector<8x128xf32>
    %83 = math.tanh %82 : vector<8x128xf32>
    %84 = arith.mulf %77, %83 : vector<8x128xf32>
    %85 = vector.extract_strided_slice %5 {offsets = [32, 0], sizes = [8, 512], strides = [1, 1]} : vector<64x512xf32> to vector<8x512xf32>
    %cst_17 = arith.constant dense<0.000000e+00> : vector<8x512xf32>
    %86 = tpu.matmul %84, %6, %cst_17 {dimension_numbers = #tpu.dot_dimension_numbers<[1], [0], [0], [1], [0, 0, 1, 1], [], []>} : vector<8x128xf32>, vector<128x512xf32>, vector<8x512xf32> -> vector<8x512xf32>
    %87 = arith.addf %85, %86 : vector<8x512xf32>
    %88 = vector.extract_strided_slice %87 {offsets = [0, 0], sizes = [8, 384], strides = [1, 1]} : vector<8x512xf32> to vector<8x384xf32>
    %89 = arith.negf %88 : vector<8x384xf32>
    %90 = math.exp %89 : vector<8x384xf32>
    %cst_18 = arith.constant 1.000000e+00 : f32
    %91 = vector.broadcast %cst_18 : f32 to vector<8x384xf32>
    %92 = arith.addf %91, %90 : vector<8x384xf32>
    %93 = arith.divf %91, %92 : vector<8x384xf32>
    %94 = vector.extract_strided_slice %93 {offsets = [0, 0], sizes = [8, 128], strides = [1, 1]} : vector<8x384xf32> to vector<8x128xf32>
    %95 = vector.extract_strided_slice %93 {offsets = [0, 128], sizes = [8, 128], strides = [1, 1]} : vector<8x384xf32> to vector<8x128xf32>
    %96 = vector.extract_strided_slice %93 {offsets = [0, 256], sizes = [8, 128], strides = [1, 1]} : vector<8x384xf32> to vector<8x128xf32>
    %97 = vector.extract_strided_slice %87 {offsets = [0, 384], sizes = [8, 128], strides = [1, 1]} : vector<8x512xf32> to vector<8x128xf32>
    %98 = math.tanh %97 : vector<8x128xf32>
    %99 = arith.mulf %95, %82 : vector<8x128xf32>
    %100 = arith.mulf %94, %98 : vector<8x128xf32>
    %101 = arith.addf %99, %100 : vector<8x128xf32>
    %102 = math.tanh %101 : vector<8x128xf32>
    %103 = arith.mulf %96, %102 : vector<8x128xf32>
    %104 = vector.extract_strided_slice %5 {offsets = [40, 0], sizes = [8, 512], strides = [1, 1]} : vector<64x512xf32> to vector<8x512xf32>
    %cst_19 = arith.constant dense<0.000000e+00> : vector<8x512xf32>
    %105 = tpu.matmul %103, %6, %cst_19 {dimension_numbers = #tpu.dot_dimension_numbers<[1], [0], [0], [1], [0, 0, 1, 1], [], []>} : vector<8x128xf32>, vector<128x512xf32>, vector<8x512xf32> -> vector<8x512xf32>
    %106 = arith.addf %104, %105 : vector<8x512xf32>
    %107 = vector.extract_strided_slice %106 {offsets = [0, 0], sizes = [8, 384], strides = [1, 1]} : vector<8x512xf32> to vector<8x384xf32>
    %108 = arith.negf %107 : vector<8x384xf32>
    %109 = math.exp %108 : vector<8x384xf32>
    %cst_20 = arith.constant 1.000000e+00 : f32
    %110 = vector.broadcast %cst_20 : f32 to vector<8x384xf32>
    %111 = arith.addf %110, %109 : vector<8x384xf32>
    %112 = arith.divf %110, %111 : vector<8x384xf32>
    %113 = vector.extract_strided_slice %112 {offsets = [0, 0], sizes = [8, 128], strides = [1, 1]} : vector<8x384xf32> to vector<8x128xf32>
    %114 = vector.extract_strided_slice %112 {offsets = [0, 128], sizes = [8, 128], strides = [1, 1]} : vector<8x384xf32> to vector<8x128xf32>
    %115 = vector.extract_strided_slice %112 {offsets = [0, 256], sizes = [8, 128], strides = [1, 1]} : vector<8x384xf32> to vector<8x128xf32>
    %116 = vector.extract_strided_slice %106 {offsets = [0, 384], sizes = [8, 128], strides = [1, 1]} : vector<8x512xf32> to vector<8x128xf32>
    %117 = math.tanh %116 : vector<8x128xf32>
    %118 = arith.mulf %114, %101 : vector<8x128xf32>
    %119 = arith.mulf %113, %117 : vector<8x128xf32>
    %120 = arith.addf %118, %119 : vector<8x128xf32>
    %121 = math.tanh %120 : vector<8x128xf32>
    %122 = arith.mulf %115, %121 : vector<8x128xf32>
    %123 = vector.extract_strided_slice %5 {offsets = [48, 0], sizes = [8, 512], strides = [1, 1]} : vector<64x512xf32> to vector<8x512xf32>
    %cst_21 = arith.constant dense<0.000000e+00> : vector<8x512xf32>
    %124 = tpu.matmul %122, %6, %cst_21 {dimension_numbers = #tpu.dot_dimension_numbers<[1], [0], [0], [1], [0, 0, 1, 1], [], []>} : vector<8x128xf32>, vector<128x512xf32>, vector<8x512xf32> -> vector<8x512xf32>
    %125 = arith.addf %123, %124 : vector<8x512xf32>
    %126 = vector.extract_strided_slice %125 {offsets = [0, 0], sizes = [8, 384], strides = [1, 1]} : vector<8x512xf32> to vector<8x384xf32>
    %127 = arith.negf %126 : vector<8x384xf32>
    %128 = math.exp %127 : vector<8x384xf32>
    %cst_22 = arith.constant 1.000000e+00 : f32
    %129 = vector.broadcast %cst_22 : f32 to vector<8x384xf32>
    %130 = arith.addf %129, %128 : vector<8x384xf32>
    %131 = arith.divf %129, %130 : vector<8x384xf32>
    %132 = vector.extract_strided_slice %131 {offsets = [0, 0], sizes = [8, 128], strides = [1, 1]} : vector<8x384xf32> to vector<8x128xf32>
    %133 = vector.extract_strided_slice %131 {offsets = [0, 128], sizes = [8, 128], strides = [1, 1]} : vector<8x384xf32> to vector<8x128xf32>
    %134 = vector.extract_strided_slice %131 {offsets = [0, 256], sizes = [8, 128], strides = [1, 1]} : vector<8x384xf32> to vector<8x128xf32>
    %135 = vector.extract_strided_slice %125 {offsets = [0, 384], sizes = [8, 128], strides = [1, 1]} : vector<8x512xf32> to vector<8x128xf32>
    %136 = math.tanh %135 : vector<8x128xf32>
    %137 = arith.mulf %133, %120 : vector<8x128xf32>
    %138 = arith.mulf %132, %136 : vector<8x128xf32>
    %139 = arith.addf %137, %138 : vector<8x128xf32>
    %140 = math.tanh %139 : vector<8x128xf32>
    %141 = arith.mulf %134, %140 : vector<8x128xf32>
    %142 = vector.extract_strided_slice %5 {offsets = [56, 0], sizes = [8, 512], strides = [1, 1]} : vector<64x512xf32> to vector<8x512xf32>
    %cst_23 = arith.constant dense<0.000000e+00> : vector<8x512xf32>
    %143 = tpu.matmul %141, %6, %cst_23 {dimension_numbers = #tpu.dot_dimension_numbers<[1], [0], [0], [1], [0, 0, 1, 1], [], []>} : vector<8x128xf32>, vector<128x512xf32>, vector<8x512xf32> -> vector<8x512xf32>
    %144 = arith.addf %142, %143 : vector<8x512xf32>
    %145 = vector.extract_strided_slice %144 {offsets = [0, 0], sizes = [8, 384], strides = [1, 1]} : vector<8x512xf32> to vector<8x384xf32>
    %146 = arith.negf %145 : vector<8x384xf32>
    %147 = math.exp %146 : vector<8x384xf32>
    %cst_24 = arith.constant 1.000000e+00 : f32
    %148 = vector.broadcast %cst_24 : f32 to vector<8x384xf32>
    %149 = arith.addf %148, %147 : vector<8x384xf32>
    %150 = arith.divf %148, %149 : vector<8x384xf32>
    %151 = vector.extract_strided_slice %150 {offsets = [0, 0], sizes = [8, 128], strides = [1, 1]} : vector<8x384xf32> to vector<8x128xf32>
    %152 = vector.extract_strided_slice %150 {offsets = [0, 128], sizes = [8, 128], strides = [1, 1]} : vector<8x384xf32> to vector<8x128xf32>
    %153 = vector.extract_strided_slice %150 {offsets = [0, 256], sizes = [8, 128], strides = [1, 1]} : vector<8x384xf32> to vector<8x128xf32>
    %154 = vector.extract_strided_slice %144 {offsets = [0, 384], sizes = [8, 128], strides = [1, 1]} : vector<8x512xf32> to vector<8x128xf32>
    %155 = math.tanh %154 : vector<8x128xf32>
    %156 = arith.mulf %152, %139 : vector<8x128xf32>
    %157 = arith.mulf %151, %155 : vector<8x128xf32>
    %158 = arith.addf %156, %157 : vector<8x128xf32>
    %159 = math.tanh %158 : vector<8x128xf32>
    %160 = arith.mulf %153, %159 : vector<8x128xf32>
    %c0_25 = arith.constant 0 : index
    %c0_26 = arith.constant 0 : index
    %161 = vector.load %arg5[%c0_25, %c0_26] : memref<1x128xf32, #tpu.memory_space<vmem>>, vector<1x128xf32>
    %162 = vector.broadcast %161 : vector<1x128xf32> to vector<8x128xf32>
    %163 = arith.mulf %160, %162 : vector<8x128xf32>
    %cst_27 = arith.constant dense<0.000000e+00> : vector<8xf32>
    %164 = vector.multi_reduction <add>, %163, %cst_27 [1] : vector<8x128xf32> to vector<8xf32>
    %165 = vector.shape_cast %164 : vector<8xf32> to vector<8x1xf32>
    %c0_28 = arith.constant 0 : index
    %c0_29 = arith.constant 0 : index
    %166 = vector.load %arg6[%c0_28, %c0_29] : memref<1x1xf32, #tpu.memory_space<vmem>>, vector<1x1xf32>
    %167 = vector.broadcast %166 : vector<1x1xf32> to vector<8x1xf32>
    %168 = arith.addf %165, %167 : vector<8x1xf32>
    %c0_30 = arith.constant 0 : index
    %c0_31 = arith.constant 0 : index
    %169 = vector.load %arg7[%c0_30, %c0_31] : memref<8x1xf32, #tpu.memory_space<vmem>>, vector<8x1xf32>
    tpu.vector_store %arg7[%c0_30, %c0_31], %168 {strides = array<i32>} : memref<8x1xf32, #tpu.memory_space<vmem>>, vector<8x1xf32>,
    return
  }
  func.func @transform_0(%arg0: i32) -> (i32, i32) {
    %c0_i32 = arith.constant 0 : i32
    %c0_i32_0 = arith.constant 0 : i32
    %c0_i32_1 = arith.constant 0 : i32
    return %c0_i32, %c0_i32_0 : i32, i32
  }
  func.func @transform_1(%arg0: i32) -> (i32, i32) {
    %c0_i32 = arith.constant 0 : i32
    %c0_i32_0 = arith.constant 0 : i32
    %c0_i32_1 = arith.constant 0 : i32
    return %c0_i32, %c0_i32_0 : i32, i32
  }
  func.func @transform_2(%arg0: i32) -> (i32, i32) {
    %c0_i32 = arith.constant 0 : i32
    %c0_i32_0 = arith.constant 0 : i32
    %c0_i32_1 = arith.constant 0 : i32
    return %c0_i32, %c0_i32_0 : i32, i32
  }
  func.func @transform_3(%arg0: i32) -> (i32, i32) {
    %c0_i32 = arith.constant 0 : i32
    %c0_i32_0 = arith.constant 0 : i32
    %c0_i32_1 = arith.constant 0 : i32
    return %c0_i32, %c0_i32_0 : i32, i32
  }
  func.func @transform_4(%arg0: i32) -> (i32, i32) {
    %c0_i32 = arith.constant 0 : i32
    %c0_i32_0 = arith.constant 0 : i32
    %c0_i32_1 = arith.constant 0 : i32
    return %c0_i32, %c0_i32_0 : i32, i32
  }
  func.func @transform_5(%arg0: i32) -> (i32, i32) {
    %c0_i32 = arith.constant 0 : i32
    %c0_i32_0 = arith.constant 0 : i32
    %c0_i32_1 = arith.constant 0 : i32
    return %c0_i32, %c0_i32_0 : i32, i32
  }
  func.func @transform_6(%arg0: i32) -> (i32, i32) {
    %c0_i32 = arith.constant 0 : i32
    %c0_i32_0 = arith.constant 0 : i32
    %c0_i32_1 = arith.constant 0 : i32
    return %c0_i32, %c0_i32_0 : i32, i32
  }
}

</mosaic_0001>

<bundles_post_ra>
// kernel: tpu_custom_call.1
= control target key start
LH: loop header
LB: loop body
LE: loop exit
PB: predicated region body
PF: predicated region fallthrough
CT: control target
= control target key end

     0   :  { %s3095_s0 = inlined_call_operand.vmem [shape: f32[64,4], index: 0, kind: input, shape index: {}]   ;;  %s3096_s1 = inlined_call_operand.vmem [shape: f32[4,512], index: 1, kind: input, shape index: {}]   ;;  %s3097_s2 = inlined_call_operand.hbm [shape: f32[128,512], index: 2, kind: input, shape index: {}]   ;;  %s3098_s3 = inlined_call_operand.vmem [shape: f32[1,512], index: 3, kind: input, shape index: {}]   ;;  %s3099_s4 = inlined_call_operand.vmem [shape: f32[1,128], index: 4, kind: input, shape index: {}]   ;;  %s3100_s5 = inlined_call_operand.<no memory space> [shape: f32[1,1], index: 5, kind: input, shape index: {}]   ;;  %s3101_s6 = inlined_call_operand.vmem [shape: f32[8,1], index: 6, kind: output, shape index: {}]  }
   0x1   :  { %v11_v0 = vstv %s3100_s5 }
   0x2   :  { %12 = vst [vmem:[#allocation2] sm:$0x1] %v11_v0 }
   0x3   :  { %13 = vsyncpa [#allocation4], 0  ;;  %s2564_s23 = smov [#allocation3]   ;;  %s2540_s27 = scalar_lea.hbm %s3097_s2, 8192 }
   0x4   :  { %s23_s24 = sshll.u32 %s2564_s23, 4  ;;  %p2541_p0 = scmp.ne.s32.totalorder %s3097_s2, %s2540_s27  ;;  %s24_s24 = int_to_ptr.vmem [resolvable:$true] %s23_s24 }
   0x5   :  { %p2544_p1 = scmp.lt.u32.totalorder %s2540_s27, %s3097_s2 }
   0x7   :  { %p2546_p2 = pnand %p2544_p1, %p2541_p0 }
   0x9   :  { %2549 = shalt.err (!%p2546_p2)
}
   0xa   :  { %s2550_s5 = scalar_lea.vmem %s24_s24, 8192  ;;  %p2555_p4 = scmp.lt.s32.totalorder %s24_s24, %s24_s24 }
   0xb   :  { %p2551_p3 = scmp.ne.s32.totalorder %s24_s24, %s2550_s5  ;;  %p2556_p5 = scmp.lt.s32.totalorder %s2550_s5, %s2550_s5 }
   0xd   :  { %p2557_p6 = por %p2556_p5, %p2555_p4 }
   0xf   :  { %p2558_p7 = pnand %p2557_p6, %p2551_p3 }
  0x11   :  { %2561 = shalt.err (!%p2558_p7)
}
  0x12   :  { %s2565_s8 = smov 512   ;;  %s2566_s9 = smov 32  }
  0x13   :  { %29 = dma.hbm_to_vmem [thread:$0]  %s3097_s2, 8192, %s24_s24, [#allocation4], %s2565_s8, %s2565_s8, %s2566_s9  }
  0x14   :  { %2562 = dma.done.wait [#allocation4], 8192  }
  0x15   :  { %2563 = vsyncadd [#allocation4], 4294959104  ;;  %v2567_v1 = vmov 0.0   ;;  %v47_v2 = vld [vmem:[%s3096_s1] sm:$0xff]  ;;  %vm100_vm0 = vcmask 1043456   ;;  %v48_v3 = vld [vmem:[%s3096_s1 + $0x8] sm:$0xff] }
  0x16   :  { %173 = vmatprep.mubr.f32.mxu0 %v2567_v1  ;;  %286 = vmatprep.mubr.f32.mxu1 %v2567_v1  ;;  %v39_v4 = vld [vmem:[%s3095_s0] sm:$0xff]  ;;  %v73_v5 = vcombine.high %v47_v2, %v47_v2  ;;  %v74_v6 = vcombine.high %v48_v3, %v48_v3  ;;  %v336_v7 = vld [vmem:[#allocation3 + $0x8] sm:$0xff]  ;;  %vm75_vm1 = vcmask 31744   ;;  %v337_v16 = vld [vmem:[#allocation3 + $0x10] sm:$0xff]  ;;  %vm1777_vm2 = vcmask 7168  }
  0x17   :  { %v340_v8 = vld [vmem:[#allocation3 + $0x28] sm:$0xff]  ;;  %v338_v9 = vld [vmem:[#allocation3 + $0x18] sm:$0xff]  ;;  %v335_v12 = vld [vmem:[#allocation3] sm:$0xff] }
  0x18   :  { %v2629_v10 = vpack.c.bf16 %v340_v8, %v336_v7  ;;  %v342_v11 = vld [vmem:[#allocation3 + $0x38] sm:$0xff]  ;;  %v339_v13 = vld [vmem:[#allocation3 + $0x20] sm:$0xff]  ;;  %1784 = vmatprep.subr.msk.mxu0 %vm100_vm0, %v73_v5  ;;  %1794 = vmatprep.subr.msk.mxu1 %vm100_vm0, %v74_v6  ;;  %v341_v17 = vld [vmem:[#allocation3 + $0x30] sm:$0xff] }
  0x19   :  { %v2633_v14 = vpack.c.bf16 %v342_v11, %v338_v9  ;;  %v2635_v15 = vpack.c.bf16 %v339_v13, %v335_v12  ;;  %1785 = vmatpush1.msk.msra.mxu0 %vm100_vm0, %v47_v2  ;;  %1795 = vmatpush1.msk.msra.mxu1 %vm100_vm0, %v48_v3  ;;  %v2639_v18 = vpack.c.bf16 %v341_v17, %v337_v16  ;;  %v344_v19 = vld [vmem:[#allocation3 + $0x48] sm:$0xff]  ;;  %v346_v21 = vld [vmem:[#allocation3 + $0x58] sm:$0xff]  ;;  %v343_v23 = vld [vmem:[#allocation3 + $0x40] sm:$0xff] }
  0x1a   :  { %v348_v20 = vld [vmem:[#allocation3 + $0x68] sm:$0xff]  ;;  %1786 = vmatmul.mubr.msk.f32.vlgmr.msra.gmra.mrb[0].mxu0 %vm75_vm1, %v39_v4  ;;  %1796 = vmatmul.mubr.msk.f32.vlgmr.msra.gmra.mrb[0].mxu1 %vm75_vm1, %v39_v4  ;;  %v350_v22 = vld [vmem:[#allocation3 + $0x78] sm:$0xff]  ;;  %v347_v24 = vld [vmem:[#allocation3 + $0x60] sm:$0xff] }
  0x1b   :  { %1831 = vmatprep.subr.bf16.mxu0 %v2629_v10  ;;  %1863 = vmatprep.subr.bf16.mxu1 %v2633_v14  ;;  %v40_v25 = vld [vmem:[%s3095_s0 + $0x8] sm:$0xff]  ;;  %v2648_v26 = vpack.c.bf16 %v348_v20, %v344_v19  ;;  %v2650_v27 = vpack.c.bf16 %v350_v22, %v346_v21  ;;  %v345_v28 = vld [vmem:[#allocation3 + $0x50] sm:$0xff]  ;;  %v2654_v30 = vpack.c.bf16 %v347_v24, %v343_v23  ;;  %v354_v34 = vld [vmem:[#allocation3 + $0x98] sm:$0xff] }
  0x1c   :  { %v349_v29 = vld [vmem:[#allocation3 + $0x70] sm:$0xff]  ;;  %1833 = vmatpush1.bf16.msra.mxu0 %v2635_v15  ;;  %1865 = vmatpush1.bf16.msra.mxu1 %v2639_v18  ;;  %v352_v32 = vld [vmem:[#allocation3 + $0x88] sm:$0xff]  ;;  %v358_v35 = vld [vmem:[#allocation3 + $0xb8] sm:$0xff] }
  0x1d   :  { %v2656_v31 = vpack.c.bf16 %v349_v29, %v345_v28  ;;  %v356_v33 = vld [vmem:[#allocation3 + $0xa8] sm:$0xff]  ;;  %179 = vmatprep.mubr.f32.mxu0 %v2567_v1  ;;  %292 = vmatprep.mubr.f32.mxu1 %v2567_v1  ;;  %v351_v36 = vld [vmem:[#allocation3 + $0x80] sm:$0xff]  ;;  %v353_v38 = vld [vmem:[#allocation3 + $0x90] sm:$0xff]  ;;  %v2669_v42 = vpack.c.bf16 %v358_v35, %v354_v34 }
  0x1e   :  { %v355_v37 = vld [vmem:[#allocation3 + $0xa0] sm:$0xff]  ;;  %1787 = vmatmul.mubr.msk.f32.gmra.mrb[2].mxu0 %vm75_vm1, %v40_v25  ;;  %1797 = vmatmul.mubr.msk.f32.gmra.mrb[2].mxu1 %vm75_vm1, %v40_v25  ;;  %v357_v39 = vld [vmem:[#allocation3 + $0xb0] sm:$0xff]  ;;  %v2667_v41 = vpack.c.bf16 %v356_v33, %v352_v32  ;;  %v360_v43 = vld [vmem:[#allocation3 + $0xc8] sm:$0xff] }
  0x1f   :  { %1835 = vmatprep.subr.bf16.mxu0 %v2648_v26  ;;  %1867 = vmatprep.subr.bf16.mxu1 %v2650_v27  ;;  %v41_v40 = vld [vmem:[%s3095_s0 + $0x10] sm:$0xff]  ;;  %v2673_v45 = vpack.c.bf16 %v355_v37, %v351_v36  ;;  %v2675_v46 = vpack.c.bf16 %v357_v39, %v353_v38  ;;  %v362_v47 = vld [vmem:[#allocation3 + $0xd8] sm:$0xff]  ;;  %v359_v49 = vld [vmem:[#allocation3 + $0xc0] sm:$0xff] }
  0x20   :  { %v364_v44 = vld [vmem:[#allocation3 + $0xe8] sm:$0xff]  ;;  %1837 = vmatpush1.bf16.msra.mxu0 %v2654_v30  ;;  %1869 = vmatpush1.bf16.msra.mxu1 %v2656_v31  ;;  %v366_v48 = vld [vmem:[#allocation3 + $0xf8] sm:$0xff]  ;;  %v363_v50 = vld [vmem:[#allocation3 + $0xe0] sm:$0xff] }
  0x21   :  { %185 = vmatprep.mubr.f32.mxu0 %v2567_v1  ;;  %298 = vmatprep.mubr.f32.mxu1 %v2567_v1  ;;  %v361_v51 = vld [vmem:[#allocation3 + $0xd0] sm:$0xff]  ;;  %v2686_v54 = vpack.c.bf16 %v364_v44, %v360_v43  ;;  %v2688_v55 = vpack.c.bf16 %v366_v48, %v362_v47  ;;  %v368_v56 = vld [vmem:[#allocation3 + $0x108] sm:$0xff]  ;;  %v2692_v58 = vpack.c.bf16 %v363_v50, %v359_v49  ;;  %v370_v60 = vld [vmem:[#allocation3 + $0x118] sm:$0xff] }
  0x22   :  { %v365_v52 = vld [vmem:[#allocation3 + $0xf0] sm:$0xff]  ;;  %1788 = vmatmul.mubr.msk.f32.gmra.mrb[4].mxu0 %vm75_vm1, %v41_v40  ;;  %1798 = vmatmul.mubr.msk.f32.gmra.mrb[4].mxu1 %vm75_vm1, %v41_v40  ;;  %v372_v57 = vld [vmem:[#allocation3 + $0x128] sm:$0xff]  ;;  %v374_v61 = vld [vmem:[#allocation3 + $0x138] sm:$0xff] }
  0x23   :  { %1839 = vmatprep.subr.bf16.mxu0 %v2667_v41  ;;  %1871 = vmatprep.subr.bf16.mxu1 %v2669_v42  ;;  %v42_v53 = vld [vmem:[%s3095_s0 + $0x18] sm:$0xff]  ;;  %v2694_v59 = vpack.c.bf16 %v365_v52, %v361_v51  ;;  %v367_v62 = vld [vmem:[#allocation3 + $0x100] sm:$0xff]  ;;  %v2705_v4 = vpack.c.bf16 %v372_v57, %v368_v56  ;;  %v2707_v5 = vpack.c.bf16 %v374_v61, %v370_v60  ;;  %v376_v6 = vld [vmem:[#allocation3 + $0x148] sm:$0xff] }
  0x24   :  { %1841 = vmatpush1.bf16.msra.mxu0 %v2673_v45  ;;  %1873 = vmatpush1.bf16.msra.mxu1 %v2675_v46  ;;  %v371_v63 = vld [vmem:[#allocation3 + $0x120] sm:$0xff]  ;;  %v369_v0 = vld [vmem:[#allocation3 + $0x110] sm:$0xff]  ;;  %v380_v7 = vld [vmem:[#allocation3 + $0x168] sm:$0xff] }
  0x25   :  { %191 = vmatprep.mubr.f32.mxu0 %v2567_v1  ;;  %304 = vmatprep.mubr.f32.mxu1 %v2567_v1  ;;  %v373_v2 = vld [vmem:[#allocation3 + $0x130] sm:$0xff]  ;;  %v43_v3 = vld [vmem:[%s3095_s0 + $0x20] sm:$0xff]  ;;  %v2711_v8 = vpack.c.bf16 %v371_v63, %v367_v62  ;;  %v44_v20 = vld [vmem:[%s3095_s0 + $0x28] sm:$0xff]  ;;  %v2724_v21 = vpack.c.bf16 %v380_v7, %v376_v6  ;;  %v51_v63 = vlaneseq }
  0x26   :  { %1789 = vmatmul.mubr.msk.f32.gmra.mrb[6].mxu0 %vm75_vm1, %v42_v53  ;;  %1799 = vmatmul.mubr.msk.f32.gmra.mrb[6].mxu1 %vm75_vm1, %v42_v53  ;;  %v2713_v9 = vpack.c.bf16 %v373_v2, %v369_v0  ;;  %v378_v11 = vld [vmem:[#allocation3 + $0x158] sm:$0xff]  ;;  %v375_v13 = vld [vmem:[#allocation3 + $0x140] sm:$0xff]  ;;  %v377_v17 = vld [vmem:[#allocation3 + $0x150] sm:$0xff] }
  0x27   :  { %1843 = vmatprep.subr.bf16.mxu0 %v2686_v54  ;;  %1875 = vmatprep.subr.bf16.mxu1 %v2688_v55  ;;  %v382_v12 = vld [vmem:[#allocation3 + $0x178] sm:$0xff]  ;;  %v379_v16 = vld [vmem:[#allocation3 + $0x160] sm:$0xff]  ;;  %v381_v19 = vld [vmem:[#allocation3 + $0x170] sm:$0xff]  ;;  %v52_v0 = vshrl.u32 %v51_v63, 7 }
  0x28   :  { %1845 = vmatpush1.bf16.msra.mxu0 %v2692_v58  ;;  %1877 = vmatpush1.bf16.msra.mxu1 %v2694_v59  ;;  %v2726_v22 = vpack.c.bf16 %v382_v12, %v378_v11  ;;  %v384_v23 = vld [vmem:[#allocation3 + $0x188] sm:$0xff]  ;;  %v2730_v25 = vpack.c.bf16 %v379_v16, %v375_v13  ;;  %v2732_v28 = vpack.c.bf16 %v381_v19, %v377_v17  ;;  %v386_v29 = vld [vmem:[#allocation3 + $0x198] sm:$0xff]  ;;  %v383_v33 = vld [vmem:[#allocation3 + $0x180] sm:$0xff] }
  0x29   :  { %197 = vmatprep.mubr.f32.mxu0 %v2567_v1  ;;  %310 = vmatprep.mubr.f32.mxu1 %v2567_v1  ;;  %v388_v24 = vld [vmem:[#allocation3 + $0x1a8] sm:$0xff]  ;;  %v390_v32 = vld [vmem:[#allocation3 + $0x1b8] sm:$0xff]  ;;  %v387_v34 = vld [vmem:[#allocation3 + $0x1a0] sm:$0xff]  ;;  %v53_v2 = vsub.s32 0, %v52_v0  ;;  %v57_v6 = vsub.s32 1, %v52_v0  ;;  %v61_v17 = vsub.s32 2, %v52_v0 }
  0x2a   :  { %1790 = vmatmul.mubr.msk.f32.gmra.mrb[8].mxu0 %vm75_vm1, %v43_v3  ;;  %1800 = vmatmul.mubr.msk.f32.gmra.mrb[8].mxu1 %vm75_vm1, %v43_v3  ;;  %v385_v35 = vld [vmem:[#allocation3 + $0x190] sm:$0xff]  ;;  %v2743_v38 = vpack.c.bf16 %v388_v24, %v384_v23  ;;  %v2745_v39 = vpack.c.bf16 %v390_v32, %v386_v29  ;;  %v392_v40 = vld [vmem:[#allocation3 + $0x1c8] sm:$0xff]  ;;  %v2749_v44 = vpack.c.bf16 %v387_v34, %v383_v33  ;;  %v394_v48 = vld [vmem:[#allocation3 + $0x1d8] sm:$0xff]  ;;  %v65_v32 = vsub.s32 3, %v52_v0 }
  0x2b   :  { %1847 = vmatprep.subr.bf16.mxu0 %v2705_v4  ;;  %1879 = vmatprep.subr.bf16.mxu1 %v2707_v5  ;;  %v389_v36 = vld [vmem:[#allocation3 + $0x1b0] sm:$0xff]  ;;  %v396_v43 = vld [vmem:[#allocation3 + $0x1e8] sm:$0xff]  ;;  %v398_v49 = vld [vmem:[#allocation3 + $0x1f8] sm:$0xff] }
  0x2c   :  { %1849 = vmatpush1.bf16.msra.mxu0 %v2711_v8  ;;  %1881 = vmatpush1.bf16.msra.mxu1 %v2713_v9  ;;  %v45_v37 = vld [vmem:[%s3095_s0 + $0x30] sm:$0xff]  ;;  %v2751_v47 = vpack.c.bf16 %v389_v36, %v385_v35  ;;  %v391_v50 = vld [vmem:[#allocation3 + $0x1c0] sm:$0xff]  ;;  %v46_v56 = vld [vmem:[%s3095_s0 + $0x38] sm:$0xff]  ;;  %v2762_v57 = vpack.c.bf16 %v396_v43, %v392_v40  ;;  %v2764_v60 = vpack.c.bf16 %v398_v49, %v394_v48 }
  0x2d   :  { %203 = vmatprep.mubr.f32.mxu0 %v2567_v1  ;;  %316 = vmatprep.mubr.f32.mxu1 %v2567_v1  ;;  %v395_v51 = vld [vmem:[#allocation3 + $0x1e0] sm:$0xff]  ;;  %v393_v52 = vld [vmem:[#allocation3 + $0x1d0] sm:$0xff] }
  0x2e   :  { %1791 = vmatmul.mubr.msk.f32.gmra.mrb[10].mxu0 %vm75_vm1, %v44_v20  ;;  %1801 = vmatmul.mubr.msk.f32.gmra.mrb[10].mxu1 %vm75_vm1, %v44_v20  ;;  %v397_v53 = vld [vmem:[#allocation3 + $0x1f0] sm:$0xff]  ;;  %v2768_v61 = vpack.c.bf16 %v395_v51, %v391_v50  ;;  %v49_v3 = vld [vmem:[%s3098_s3] sm:$0xf] }
  0x2f   :  { %1851 = vmatprep.subr.bf16.mxu0 %v2724_v21  ;;  %1883 = vmatprep.subr.bf16.mxu1 %v2726_v22  ;;  %v2770_v62 = vpack.c.bf16 %v397_v53, %v393_v52  ;;  %v2823_v7 = vrot.slane %v49_v3, %v53_v2  ;;  %v2825_v11 = vrot.slane %v49_v3, %v57_v6 }
  0x30   :  { %1853 = vmatpush1.bf16.msra.mxu0 %v2730_v25  ;;  %1885 = vmatpush1.bf16.msra.mxu1 %v2732_v28  ;;  %v2829_v33 = vrot.slane %v49_v3, %v61_v17  ;;  %v2831_v34 = vrot.slane %v49_v3, %v65_v32 }
  0x31   :  { %209 = vmatprep.mubr.f32.mxu0 %v2567_v1  ;;  %322 = vmatprep.mubr.f32.mxu1 %v2567_v1 }
  0x32   :  { %1792 = vmatmul.mubr.msk.f32.gmra.mrb[12].mxu0 %vm75_vm1, %v45_v37  ;;  %1802 = vmatmul.mubr.msk.f32.gmra.mrb[12].mxu1 %vm75_vm1, %v45_v37 }
  0x33   :  { %1855 = vmatprep.subr.bf16.mxu0 %v2743_v38  ;;  %1887 = vmatprep.subr.bf16.mxu1 %v2745_v39 }
  0x34   :  { %1857 = vmatpush1.bf16.msra.mxu0 %v2749_v44  ;;  %1889 = vmatpush1.bf16.msra.mxu1 %v2751_v47 }
  0x35   :  { %215 = vmatprep.mubr.f32.mxu0 %v2567_v1  ;;  %328 = vmatprep.mubr.f32.mxu1 %v2567_v1 }
  0x36   :  { %1793 = vmatmul.mubr.msk.f32.gmra.mrb[14].mxu0 %vm75_vm1, %v46_v56  ;;  %1803 = vmatmul.mubr.msk.f32.gmra.mrb[14].mxu1 %vm75_vm1, %v46_v56 }
  0x37   :  { %1859 = vmatprep.subr.bf16.mxu0 %v2762_v57  ;;  %1891 = vmatprep.subr.bf16.mxu1 %v2764_v60 }
  0x38   :  { %1861 = vmatpush1.bf16.msra.mxu0 %v2768_v61  ;;  %1893 = vmatpush1.bf16.msra.mxu1 %v2770_v62 }
  0x39   :  { %463 = vmatprep.mubr.f32.mxu0 %v2567_v1  ;;  %534 = vmatprep.mubr.f32.mxu1 %v2567_v1 }
  0x3a   :  { %1895 = vmatprep.subr.bf16.mxu0 %v2629_v10  ;;  %1927 = vmatprep.subr.bf16.mxu1 %v2633_v14 }
  0x3b   :  { %464 = vmatmul.mubr.f32.vlgmr.msra.gmra.mrb[0].mxu0 %v2567_v1  ;;  %535 = vmatmul.mubr.f32.vlgmr.msra.gmra.mrb[0].mxu1 %v2567_v1 }
  0x3c   :  { %1897 = vmatpush1.bf16.msra.mxu0 %v2635_v15  ;;  %1929 = vmatpush1.bf16.msra.mxu1 %v2639_v18 }
  0x3d   :  { %1899 = vmatprep.subr.bf16.mxu0 %v2648_v26  ;;  %1931 = vmatprep.subr.bf16.mxu1 %v2650_v27 }
  0x3e   :  { %633 = vmatprep.mubr.f32.mxu0 %v2567_v1  ;;  %704 = vmatprep.mubr.f32.mxu1 %v2567_v1 }
  0x40   :  { %1901 = vmatpush1.bf16.msra.mxu0 %v2654_v30  ;;  %1933 = vmatpush1.bf16.msra.mxu1 %v2656_v31 }
  0x41   :  { %1903 = vmatprep.subr.bf16.mxu0 %v2667_v41  ;;  %1935 = vmatprep.subr.bf16.mxu1 %v2669_v42 }
  0x44   :  { %1905 = vmatpush1.bf16.msra.mxu0 %v2673_v45  ;;  %1937 = vmatpush1.bf16.msra.mxu1 %v2675_v46 }
  0x45   :  { %1907 = vmatprep.subr.bf16.mxu0 %v2686_v54  ;;  %1939 = vmatprep.subr.bf16.mxu1 %v2688_v55 }
  0x48   :  { %1909 = vmatpush1.bf16.msra.mxu0 %v2692_v58  ;;  %1941 = vmatpush1.bf16.msra.mxu1 %v2694_v59 }
  0x49   :  { %1911 = vmatprep.subr.bf16.mxu0 %v2705_v4  ;;  %1943 = vmatprep.subr.bf16.mxu1 %v2707_v5 }
  0x4c   :  { %1913 = vmatpush1.bf16.msra.mxu0 %v2711_v8  ;;  %1945 = vmatpush1.bf16.msra.mxu1 %v2713_v9 }
  0x4d   :  { %1915 = vmatprep.subr.bf16.mxu0 %v2724_v21  ;;  %1947 = vmatprep.subr.bf16.mxu1 %v2726_v22 }
  0x50   :  { %1917 = vmatpush1.bf16.msra.mxu0 %v2730_v25  ;;  %1949 = vmatpush1.bf16.msra.mxu1 %v2732_v28 }
  0x51   :  { %1919 = vmatprep.subr.bf16.mxu0 %v2743_v38  ;;  %1951 = vmatprep.subr.bf16.mxu1 %v2745_v39 }
  0x54   :  { %1921 = vmatpush1.bf16.msra.mxu0 %v2749_v44  ;;  %1953 = vmatpush1.bf16.msra.mxu1 %v2751_v47 }
  0x55   :  { %1923 = vmatprep.subr.bf16.mxu0 %v2762_v57  ;;  %1955 = vmatprep.subr.bf16.mxu1 %v2764_v60 }
  0x58   :  { %1925 = vmatpush1.bf16.msra.mxu0 %v2768_v61  ;;  %1957 = vmatpush1.bf16.msra.mxu1 %v2770_v62 }
  0x59   :  { %1959 = vmatprep.subr.bf16.mxu0 %v2629_v10  ;;  %1991 = vmatprep.subr.bf16.mxu1 %v2633_v14 }
 0x10e   :  { %v465_v12 = vpop.f32.mrb[0].mxu0  ;;  %v536_v13 = vpop.f32.mrb[0].mxu1 }
 0x10f   :  { %v2342_v16 = vadd.f32 %v465_v12, %v2823_v7  ;;  %v467_v19 = vpop.f32.mrb[1].mxu0  ;;  %v538_v20 = vpop.f32.mrb[1].mxu1  ;;  %v2358_v35 = vadd.f32 %v536_v13, %v2829_v33 }
 0x110   :  { %v2343_v23 = vadd.f32 %v467_v19, %v2825_v11  ;;  %v2359_v36 = vadd.f32 %v538_v20, %v2831_v34 }
 0x111   :  { %v1804_v24 = vmul.f32 -1.442695, %v2342_v16  ;;  %v1806_v37 = vmul.f32 -1.442695, %v2358_v35 }
 0x112   :  { %v1805_v29 = vmul.f32 -1.442695, %v2343_v23 }
 0x113   :  { %2412 = vpow2.f32 %v1804_v24 }
 0x114   :  { %2414 = vpow2.f32 %v1805_v29 }
 0x115   :  { %2416 = vtanh.f32 %v2359_v36 }
 0x116   :  { %2418 = vpow2.f32 %v1806_v37 }
 0x11d   :  { %v2413_v40 = vpop.eup %2412 }
 0x11e   :  { %v554_v43 = vadd.f32 1.0, %v2413_v40  ;;  %v2415_v48 = vpop.eup %2414 }
 0x11f   :  { %v555_v49 = vadd.f32 1.0, %v2415_v48  ;;  %v2417_v50 = vpop.eup %2416 }
 0x120   :  { %2420 = vrcp.f32 %v554_v43  ;;  %v2419_v51 = vpop.eup %2418 }
 0x121   :  { %2422 = vrcp.f32 %v555_v49  ;;  %v556_v63 = vadd.f32 1.0, %v2419_v51 }
 0x123   :  { %2424 = vrcp.f32 %v556_v63 }
 0x12a   :  { %v2421_v52 = vpop.eup %2420 }
 0x12b   :  { %v565_v53 = vmul.f32 %v2421_v52, %v2417_v50  ;;  %v2423_v56 = vpop.eup %2422 }
 0x12c   :  { %v564_v0 = vmul.f32 0.0, %v2423_v56 }
 0x12d   :  { %v2425_v3 = vpop.eup %2424 }
 0x12e   :  { %v2835_v2 = vadd.f32 %v565_v53, %v564_v0 }
 0x130   :  { %2426 = vtanh.f32 %v2835_v2 }
 0x13a   :  { %v2427_v6 = vpop.eup %2426 }
 0x13b   :  { %v568_v12 = vmul.f32 %v2427_v6, %v2425_v3 }
 0x13d   :  { %634 = vmatmul.mubr.f32.vlgmr.msra.gmra.mrb[2].mxu0 %v568_v12  ;;  %705 = vmatmul.mubr.f32.vlgmr.msra.gmra.mrb[2].mxu1 %v568_v12 }
 0x13e   :  { %1961 = vmatpush1.bf16.msra.mxu0 %v2635_v15  ;;  %1993 = vmatpush1.bf16.msra.mxu1 %v2639_v18 }
 0x13f   :  { %1963 = vmatprep.subr.bf16.mxu0 %v2648_v26  ;;  %1995 = vmatprep.subr.bf16.mxu1 %v2650_v27 }
 0x140   :  { %803 = vmatprep.mubr.f32.mxu0 %v2567_v1  ;;  %874 = vmatprep.mubr.f32.mxu1 %v2567_v1 }
 0x142   :  { %1965 = vmatpush1.bf16.msra.mxu0 %v2654_v30  ;;  %1997 = vmatpush1.bf16.msra.mxu1 %v2656_v31 }
 0x143   :  { %1967 = vmatprep.subr.bf16.mxu0 %v2667_v41  ;;  %1999 = vmatprep.subr.bf16.mxu1 %v2669_v42 }
 0x146   :  { %1969 = vmatpush1.bf16.msra.mxu0 %v2673_v45  ;;  %2001 = vmatpush1.bf16.msra.mxu1 %v2675_v46 }
 0x147   :  { %1971 = vmatprep.subr.bf16.mxu0 %v2686_v54  ;;  %2003 = vmatprep.subr.bf16.mxu1 %v2688_v55 }
 0x14a   :  { %1973 = vmatpush1.bf16.msra.mxu0 %v2692_v58  ;;  %2005 = vmatpush1.bf16.msra.mxu1 %v2694_v59 }
 0x14b   :  { %1975 = vmatprep.subr.bf16.mxu0 %v2705_v4  ;;  %2007 = vmatprep.subr.bf16.mxu1 %v2707_v5 }
 0x14e   :  { %1977 = vmatpush1.bf16.msra.mxu0 %v2711_v8  ;;  %2009 = vmatpush1.bf16.msra.mxu1 %v2713_v9 }
 0x14f   :  { %1979 = vmatprep.subr.bf16.mxu0 %v2724_v21  ;;  %2011 = vmatprep.subr.bf16.mxu1 %v2726_v22 }
 0x152   :  { %1981 = vmatpush1.bf16.msra.mxu0 %v2730_v25  ;;  %2013 = vmatpush1.bf16.msra.mxu1 %v2732_v28 }
 0x153   :  { %1983 = vmatprep.subr.bf16.mxu0 %v2743_v38  ;;  %2015 = vmatprep.subr.bf16.mxu1 %v2745_v39 }
 0x156   :  { %1985 = vmatpush1.bf16.msra.mxu0 %v2749_v44  ;;  %2017 = vmatpush1.bf16.msra.mxu1 %v2751_v47 }
 0x157   :  { %1987 = vmatprep.subr.bf16.mxu0 %v2762_v57  ;;  %2019 = vmatprep.subr.bf16.mxu1 %v2764_v60 }
 0x15a   :  { %1989 = vmatpush1.bf16.msra.mxu0 %v2768_v61  ;;  %2021 = vmatpush1.bf16.msra.mxu1 %v2770_v62 }
 0x15b   :  { %2023 = vmatprep.subr.bf16.mxu0 %v2629_v10  ;;  %2055 = vmatprep.subr.bf16.mxu1 %v2633_v14 }
 0x210   :  { %v635_v13 = vpop.f32.mrb[2].mxu0  ;;  %v706_v16 = vpop.f32.mrb[2].mxu1 }
 0x211   :  { %v2344_v17 = vadd.f32 %v635_v13, %v2823_v7  ;;  %v637_v19 = vpop.f32.mrb[3].mxu0  ;;  %v708_v20 = vpop.f32.mrb[3].mxu1  ;;  %v2360_v32 = vadd.f32 %v706_v16, %v2829_v33 }
 0x212   :  { %v2345_v23 = vadd.f32 %v637_v19, %v2825_v11  ;;  %v2361_v35 = vadd.f32 %v708_v20, %v2831_v34 }
 0x213   :  { %v1807_v24 = vmul.f32 -1.442695, %v2344_v17  ;;  %v1809_v36 = vmul.f32 -1.442695, %v2360_v32 }
 0x214   :  { %v1808_v29 = vmul.f32 -1.442695, %v2345_v23 }
 0x215   :  { %2428 = vpow2.f32 %v1807_v24 }
 0x216   :  { %2430 = vpow2.f32 %v1808_v29 }
 0x217   :  { %2432 = vtanh.f32 %v2361_v35 }
 0x218   :  { %2434 = vpow2.f32 %v1809_v36 }
 0x21f   :  { %v2429_v37 = vpop.eup %2428 }
 0x220   :  { %v724_v40 = vadd.f32 1.0, %v2429_v37  ;;  %v2431_v43 = vpop.eup %2430 }
 0x221   :  { %v725_v48 = vadd.f32 1.0, %v2431_v43  ;;  %v2433_v49 = vpop.eup %2432 }
 0x222   :  { %2436 = vrcp.f32 %v724_v40  ;;  %v2435_v50 = vpop.eup %2434 }
 0x223   :  { %2438 = vrcp.f32 %v725_v48  ;;  %v726_v56 = vadd.f32 1.0, %v2435_v50 }
 0x225   :  { %2440 = vrcp.f32 %v726_v56 }
 0x22c   :  { %v2437_v51 = vpop.eup %2436 }
 0x22d   :  { %v735_v52 = vmul.f32 %v2437_v51, %v2433_v49  ;;  %v2439_v53 = vpop.eup %2438 }
 0x22e   :  { %v734_v63 = vmul.f32 %v2439_v53, %v2835_v2 }
 0x22f   :  { %v2441_v3 = vpop.eup %2440 }
 0x230   :  { %v2877_v0 = vadd.f32 %v735_v52, %v734_v63 }
 0x232   :  { %2442 = vtanh.f32 %v2877_v0 }
 0x23c   :  { %v2443_v6 = vpop.eup %2442 }
 0x23d   :  { %v738_v12 = vmul.f32 %v2443_v6, %v2441_v3 }
 0x23f   :  { %804 = vmatmul.mubr.f32.vlgmr.msra.gmra.mrb[4].mxu0 %v738_v12  ;;  %875 = vmatmul.mubr.f32.vlgmr.msra.gmra.mrb[4].mxu1 %v738_v12 }
 0x240   :  { %2025 = vmatpush1.bf16.msra.mxu0 %v2635_v15  ;;  %2057 = vmatpush1.bf16.msra.mxu1 %v2639_v18 }
 0x241   :  { %2027 = vmatprep.subr.bf16.mxu0 %v2648_v26  ;;  %2059 = vmatprep.subr.bf16.mxu1 %v2650_v27 }
 0x242   :  { %973 = vmatprep.mubr.f32.mxu0 %v2567_v1  ;;  %1044 = vmatprep.mubr.f32.mxu1 %v2567_v1 }
 0x244   :  { %2029 = vmatpush1.bf16.msra.mxu0 %v2654_v30  ;;  %2061 = vmatpush1.bf16.msra.mxu1 %v2656_v31 }
 0x245   :  { %2031 = vmatprep.subr.bf16.mxu0 %v2667_v41  ;;  %2063 = vmatprep.subr.bf16.mxu1 %v2669_v42 }
 0x248   :  { %2033 = vmatpush1.bf16.msra.mxu0 %v2673_v45  ;;  %2065 = vmatpush1.bf16.msra.mxu1 %v2675_v46 }
 0x249   :  { %2035 = vmatprep.subr.bf16.mxu0 %v2686_v54  ;;  %2067 = vmatprep.subr.bf16.mxu1 %v2688_v55 }
 0x24c   :  { %2037 = vmatpush1.bf16.msra.mxu0 %v2692_v58  ;;  %2069 = vmatpush1.bf16.msra.mxu1 %v2694_v59 }
 0x24d   :  { %2039 = vmatprep.subr.bf16.mxu0 %v2705_v4  ;;  %2071 = vmatprep.subr.bf16.mxu1 %v2707_v5 }
 0x250   :  { %2041 = vmatpush1.bf16.msra.mxu0 %v2711_v8  ;;  %2073 = vmatpush1.bf16.msra.mxu1 %v2713_v9 }
 0x251   :  { %2043 = vmatprep.subr.bf16.mxu0 %v2724_v21  ;;  %2075 = vmatprep.subr.bf16.mxu1 %v2726_v22 }
 0x254   :  { %2045 = vmatpush1.bf16.msra.mxu0 %v2730_v25  ;;  %2077 = vmatpush1.bf16.msra.mxu1 %v2732_v28 }
 0x255   :  { %2047 = vmatprep.subr.bf16.mxu0 %v2743_v38  ;;  %2079 = vmatprep.subr.bf16.mxu1 %v2745_v39 }
 0x258   :  { %2049 = vmatpush1.bf16.msra.mxu0 %v2749_v44  ;;  %2081 = vmatpush1.bf16.msra.mxu1 %v2751_v47 }
 0x259   :  { %2051 = vmatprep.subr.bf16.mxu0 %v2762_v57  ;;  %2083 = vmatprep.subr.bf16.mxu1 %v2764_v60 }
 0x25c   :  { %2053 = vmatpush1.bf16.msra.mxu0 %v2768_v61  ;;  %2085 = vmatpush1.bf16.msra.mxu1 %v2770_v62 }
 0x25d   :  { %2087 = vmatprep.subr.bf16.mxu0 %v2629_v10  ;;  %2119 = vmatprep.subr.bf16.mxu1 %v2633_v14 }
 0x312   :  { %v805_v2 = vpop.f32.mrb[4].mxu0  ;;  %v876_v13 = vpop.f32.mrb[4].mxu1 }
 0x313   :  { %v2346_v16 = vadd.f32 %v805_v2, %v2823_v7  ;;  %v807_v17 = vpop.f32.mrb[5].mxu0  ;;  %v878_v19 = vpop.f32.mrb[5].mxu1  ;;  %v2362_v29 = vadd.f32 %v876_v13, %v2829_v33 }
 0x314   :  { %v2347_v20 = vadd.f32 %v807_v17, %v2825_v11  ;;  %v2363_v32 = vadd.f32 %v878_v19, %v2831_v34 }
 0x315   :  { %v1810_v23 = vmul.f32 -1.442695, %v2346_v16  ;;  %v1812_v35 = vmul.f32 -1.442695, %v2362_v29 }
 0x316   :  { %v1811_v24 = vmul.f32 -1.442695, %v2347_v20 }
 0x317   :  { %2444 = vpow2.f32 %v1810_v23 }
 0x318   :  { %2446 = vpow2.f32 %v1811_v24 }
 0x319   :  { %2448 = vtanh.f32 %v2363_v32 }
 0x31a   :  { %2450 = vpow2.f32 %v1812_v35 }
 0x321   :  { %v2445_v36 = vpop.eup %2444 }
 0x322   :  { %v894_v37 = vadd.f32 1.0, %v2445_v36  ;;  %v2447_v40 = vpop.eup %2446 }
 0x323   :  { %v895_v43 = vadd.f32 1.0, %v2447_v40  ;;  %v2449_v48 = vpop.eup %2448 }
 0x324   :  { %2452 = vrcp.f32 %v894_v37  ;;  %v2451_v49 = vpop.eup %2450 }
 0x325   :  { %2454 = vrcp.f32 %v895_v43  ;;  %v896_v53 = vadd.f32 1.0, %v2451_v49 }
 0x327   :  { %2456 = vrcp.f32 %v896_v53 }
 0x32e   :  { %v2453_v50 = vpop.eup %2452 }
 0x32f   :  { %v905_v51 = vmul.f32 %v2453_v50, %v2449_v48  ;;  %v2455_v52 = vpop.eup %2454 }
 0x330   :  { %v904_v56 = vmul.f32 %v2455_v52, %v2877_v0 }
 0x331   :  { %v2457_v3 = vpop.eup %2456 }
 0x332   :  { %v2919_v63 = vadd.f32 %v905_v51, %v904_v56 }
 0x334   :  { %2458 = vtanh.f32 %v2919_v63 }
 0x33e   :  { %v2459_v6 = vpop.eup %2458 }
 0x33f   :  { %v908_v12 = vmul.f32 %v2459_v6, %v2457_v3 }
 0x341   :  { %974 = vmatmul.mubr.f32.vlgmr.msra.gmra.mrb[6].mxu0 %v908_v12  ;;  %1045 = vmatmul.mubr.f32.vlgmr.msra.gmra.mrb[6].mxu1 %v908_v12 }
 0x342   :  { %2089 = vmatpush1.bf16.msra.mxu0 %v2635_v15  ;;  %2121 = vmatpush1.bf16.msra.mxu1 %v2639_v18 }
 0x343   :  { %2091 = vmatprep.subr.bf16.mxu0 %v2648_v26  ;;  %2123 = vmatprep.subr.bf16.mxu1 %v2650_v27 }
 0x344   :  { %1143 = vmatprep.mubr.f32.mxu0 %v2567_v1  ;;  %1214 = vmatprep.mubr.f32.mxu1 %v2567_v1 }
 0x346   :  { %2093 = vmatpush1.bf16.msra.mxu0 %v2654_v30  ;;  %2125 = vmatpush1.bf16.msra.mxu1 %v2656_v31 }
 0x347   :  { %2095 = vmatprep.subr.bf16.mxu0 %v2667_v41  ;;  %2127 = vmatprep.subr.bf16.mxu1 %v2669_v42 }
 0x34a   :  { %2097 = vmatpush1.bf16.msra.mxu0 %v2673_v45  ;;  %2129 = vmatpush1.bf16.msra.mxu1 %v2675_v46 }
 0x34b   :  { %2099 = vmatprep.subr.bf16.mxu0 %v2686_v54  ;;  %2131 = vmatprep.subr.bf16.mxu1 %v2688_v55 }
 0x34e   :  { %2101 = vmatpush1.bf16.msra.mxu0 %v2692_v58  ;;  %2133 = vmatpush1.bf16.msra.mxu1 %v2694_v59 }
 0x34f   :  { %2103 = vmatprep.subr.bf16.mxu0 %v2705_v4  ;;  %2135 = vmatprep.subr.bf16.mxu1 %v2707_v5 }
 0x352   :  { %2105 = vmatpush1.bf16.msra.mxu0 %v2711_v8  ;;  %2137 = vmatpush1.bf16.msra.mxu1 %v2713_v9 }
 0x353   :  { %2107 = vmatprep.subr.bf16.mxu0 %v2724_v21  ;;  %2139 = vmatprep.subr.bf16.mxu1 %v2726_v22 }
 0x356   :  { %2109 = vmatpush1.bf16.msra.mxu0 %v2730_v25  ;;  %2141 = vmatpush1.bf16.msra.mxu1 %v2732_v28 }
 0x357   :  { %2111 = vmatprep.subr.bf16.mxu0 %v2743_v38  ;;  %2143 = vmatprep.subr.bf16.mxu1 %v2745_v39 }
 0x35a   :  { %2113 = vmatpush1.bf16.msra.mxu0 %v2749_v44  ;;  %2145 = vmatpush1.bf16.msra.mxu1 %v2751_v47 }
 0x35b   :  { %2115 = vmatprep.subr.bf16.mxu0 %v2762_v57  ;;  %2147 = vmatprep.subr.bf16.mxu1 %v2764_v60 }
 0x35e   :  { %2117 = vmatpush1.bf16.msra.mxu0 %v2768_v61  ;;  %2149 = vmatpush1.bf16.msra.mxu1 %v2770_v62 }
 0x35f   :  { %2151 = vmatprep.subr.bf16.mxu0 %v2629_v10  ;;  %2183 = vmatprep.subr.bf16.mxu1 %v2633_v14 }
 0x414   :  { %v975_v0 = vpop.f32.mrb[6].mxu0  ;;  %v1046_v2 = vpop.f32.mrb[6].mxu1 }
 0x415   :  { %v2348_v13 = vadd.f32 %v975_v0, %v2823_v7  ;;  %v977_v16 = vpop.f32.mrb[7].mxu0  ;;  %v1048_v17 = vpop.f32.mrb[7].mxu1  ;;  %v2364_v24 = vadd.f32 %v1046_v2, %v2829_v33 }
 0x416   :  { %v2349_v19 = vadd.f32 %v977_v16, %v2825_v11  ;;  %v2365_v29 = vadd.f32 %v1048_v17, %v2831_v34 }
 0x417   :  { %v1813_v20 = vmul.f32 -1.442695, %v2348_v13  ;;  %v1815_v32 = vmul.f32 -1.442695, %v2364_v24 }
 0x418   :  { %v1814_v23 = vmul.f32 -1.442695, %v2349_v19 }
 0x419   :  { %2460 = vpow2.f32 %v1813_v20 }
 0x41a   :  { %2462 = vpow2.f32 %v1814_v23 }
 0x41b   :  { %2464 = vtanh.f32 %v2365_v29 }
 0x41c   :  { %2466 = vpow2.f32 %v1815_v32 }
 0x423   :  { %v2461_v35 = vpop.eup %2460 }
 0x424   :  { %v1064_v36 = vadd.f32 1.0, %v2461_v35  ;;  %v2463_v37 = vpop.eup %2462 }
 0x425   :  { %v1065_v40 = vadd.f32 1.0, %v2463_v37  ;;  %v2465_v43 = vpop.eup %2464 }
 0x426   :  { %2468 = vrcp.f32 %v1064_v36  ;;  %v2467_v48 = vpop.eup %2466 }
 0x427   :  { %2470 = vrcp.f32 %v1065_v40  ;;  %v1066_v52 = vadd.f32 1.0, %v2467_v48 }
 0x429   :  { %2472 = vrcp.f32 %v1066_v52 }
 0x430   :  { %v2469_v49 = vpop.eup %2468 }
 0x431   :  { %v1075_v50 = vmul.f32 %v2469_v49, %v2465_v43  ;;  %v2471_v51 = vpop.eup %2470 }
 0x432   :  { %v1074_v53 = vmul.f32 %v2471_v51, %v2919_v63 }
 0x433   :  { %v2473_v3 = vpop.eup %2472 }
 0x434   :  { %v2961_v56 = vadd.f32 %v1075_v50, %v1074_v53 }
 0x436   :  { %2474 = vtanh.f32 %v2961_v56 }
 0x440   :  { %v2475_v6 = vpop.eup %2474 }
 0x441   :  { %v1078_v12 = vmul.f32 %v2475_v6, %v2473_v3 }
 0x443   :  { %1144 = vmatmul.mubr.f32.vlgmr.msra.gmra.mrb[8].mxu0 %v1078_v12  ;;  %1215 = vmatmul.mubr.f32.vlgmr.msra.gmra.mrb[8].mxu1 %v1078_v12 }
 0x444   :  { %2153 = vmatpush1.bf16.msra.mxu0 %v2635_v15  ;;  %2185 = vmatpush1.bf16.msra.mxu1 %v2639_v18 }
 0x445   :  { %2155 = vmatprep.subr.bf16.mxu0 %v2648_v26  ;;  %2187 = vmatprep.subr.bf16.mxu1 %v2650_v27 }
 0x446   :  { %1313 = vmatprep.mubr.f32.mxu0 %v2567_v1  ;;  %1384 = vmatprep.mubr.f32.mxu1 %v2567_v1 }
 0x448   :  { %2157 = vmatpush1.bf16.msra.mxu0 %v2654_v30  ;;  %2189 = vmatpush1.bf16.msra.mxu1 %v2656_v31 }
 0x449   :  { %2159 = vmatprep.subr.bf16.mxu0 %v2667_v41  ;;  %2191 = vmatprep.subr.bf16.mxu1 %v2669_v42 }
 0x44c   :  { %2161 = vmatpush1.bf16.msra.mxu0 %v2673_v45  ;;  %2193 = vmatpush1.bf16.msra.mxu1 %v2675_v46 }
 0x44d   :  { %2163 = vmatprep.subr.bf16.mxu0 %v2686_v54  ;;  %2195 = vmatprep.subr.bf16.mxu1 %v2688_v55 }
 0x450   :  { %2165 = vmatpush1.bf16.msra.mxu0 %v2692_v58  ;;  %2197 = vmatpush1.bf16.msra.mxu1 %v2694_v59 }
 0x451   :  { %2167 = vmatprep.subr.bf16.mxu0 %v2705_v4  ;;  %2199 = vmatprep.subr.bf16.mxu1 %v2707_v5 }
 0x454   :  { %2169 = vmatpush1.bf16.msra.mxu0 %v2711_v8  ;;  %2201 = vmatpush1.bf16.msra.mxu1 %v2713_v9 }
 0x455   :  { %2171 = vmatprep.subr.bf16.mxu0 %v2724_v21  ;;  %2203 = vmatprep.subr.bf16.mxu1 %v2726_v22 }
 0x458   :  { %2173 = vmatpush1.bf16.msra.mxu0 %v2730_v25  ;;  %2205 = vmatpush1.bf16.msra.mxu1 %v2732_v28 }
 0x459   :  { %2175 = vmatprep.subr.bf16.mxu0 %v2743_v38  ;;  %2207 = vmatprep.subr.bf16.mxu1 %v2745_v39 }
 0x45c   :  { %2177 = vmatpush1.bf16.msra.mxu0 %v2749_v44  ;;  %2209 = vmatpush1.bf16.msra.mxu1 %v2751_v47 }
 0x45d   :  { %2179 = vmatprep.subr.bf16.mxu0 %v2762_v57  ;;  %2211 = vmatprep.subr.bf16.mxu1 %v2764_v60 }
 0x460   :  { %2181 = vmatpush1.bf16.msra.mxu0 %v2768_v61  ;;  %2213 = vmatpush1.bf16.msra.mxu1 %v2770_v62 }
 0x461   :  { %2215 = vmatprep.subr.bf16.mxu0 %v2629_v10  ;;  %2247 = vmatprep.subr.bf16.mxu1 %v2633_v14 }
 0x516   :  { %v1145_v63 = vpop.f32.mrb[8].mxu0  ;;  %v1216_v0 = vpop.f32.mrb[8].mxu1 }
 0x517   :  { %v2350_v2 = vadd.f32 %v1145_v63, %v2823_v7  ;;  %v1147_v13 = vpop.f32.mrb[9].mxu0  ;;  %v1218_v16 = vpop.f32.mrb[9].mxu1  ;;  %v2366_v23 = vadd.f32 %v1216_v0, %v2829_v33 }
 0x518   :  { %v2351_v17 = vadd.f32 %v1147_v13, %v2825_v11  ;;  %v2367_v24 = vadd.f32 %v1218_v16, %v2831_v34 }
 0x519   :  { %v1816_v19 = vmul.f32 -1.442695, %v2350_v2  ;;  %v1818_v29 = vmul.f32 -1.442695, %v2366_v23 }
 0x51a   :  { %v1817_v20 = vmul.f32 -1.442695, %v2351_v17 }
 0x51b   :  { %2476 = vpow2.f32 %v1816_v19 }
 0x51c   :  { %2478 = vpow2.f32 %v1817_v20 }
 0x51d   :  { %2480 = vtanh.f32 %v2367_v24 }
 0x51e   :  { %2482 = vpow2.f32 %v1818_v29 }
 0x525   :  { %v2477_v32 = vpop.eup %2476 }
 0x526   :  { %v1234_v35 = vadd.f32 1.0, %v2477_v32  ;;  %v2479_v36 = vpop.eup %2478 }
 0x527   :  { %v1235_v37 = vadd.f32 1.0, %v2479_v36  ;;  %v2481_v40 = vpop.eup %2480 }
 0x528   :  { %2484 = vrcp.f32 %v1234_v35  ;;  %v2483_v43 = vpop.eup %2482 }
 0x529   :  { %2486 = vrcp.f32 %v1235_v37  ;;  %v1236_v51 = vadd.f32 1.0, %v2483_v43 }
 0x52b   :  { %2488 = vrcp.f32 %v1236_v51 }
 0x532   :  { %v2485_v48 = vpop.eup %2484 }
 0x533   :  { %v1245_v49 = vmul.f32 %v2485_v48, %v2481_v40  ;;  %v2487_v50 = vpop.eup %2486 }
 0x534   :  { %v1244_v52 = vmul.f32 %v2487_v50, %v2961_v56 }
 0x535   :  { %v2489_v3 = vpop.eup %2488 }
 0x536   :  { %v3003_v53 = vadd.f32 %v1245_v49, %v1244_v52 }
 0x538   :  { %2490 = vtanh.f32 %v3003_v53 }
 0x542   :  { %v2491_v6 = vpop.eup %2490 }
 0x543   :  { %v1248_v12 = vmul.f32 %v2491_v6, %v2489_v3 }
 0x545   :  { %1314 = vmatmul.mubr.f32.vlgmr.msra.gmra.mrb[10].mxu0 %v1248_v12  ;;  %1385 = vmatmul.mubr.f32.vlgmr.msra.gmra.mrb[10].mxu1 %v1248_v12 }
 0x546   :  { %2217 = vmatpush1.bf16.msra.mxu0 %v2635_v15  ;;  %2249 = vmatpush1.bf16.msra.mxu1 %v2639_v18 }
 0x547   :  { %2219 = vmatprep.subr.bf16.mxu0 %v2648_v26  ;;  %2251 = vmatprep.subr.bf16.mxu1 %v2650_v27 }
 0x548   :  { %1483 = vmatprep.mubr.f32.mxu0 %v2567_v1  ;;  %1554 = vmatprep.mubr.f32.mxu1 %v2567_v1 }
 0x54a   :  { %2221 = vmatpush1.bf16.msra.mxu0 %v2654_v30  ;;  %2253 = vmatpush1.bf16.msra.mxu1 %v2656_v31 }
 0x54b   :  { %2223 = vmatprep.subr.bf16.mxu0 %v2667_v41  ;;  %2255 = vmatprep.subr.bf16.mxu1 %v2669_v42 }
 0x54e   :  { %2225 = vmatpush1.bf16.msra.mxu0 %v2673_v45  ;;  %2257 = vmatpush1.bf16.msra.mxu1 %v2675_v46 }
 0x54f   :  { %2227 = vmatprep.subr.bf16.mxu0 %v2686_v54  ;;  %2259 = vmatprep.subr.bf16.mxu1 %v2688_v55 }
 0x552   :  { %2229 = vmatpush1.bf16.msra.mxu0 %v2692_v58  ;;  %2261 = vmatpush1.bf16.msra.mxu1 %v2694_v59 }
 0x553   :  { %2231 = vmatprep.subr.bf16.mxu0 %v2705_v4  ;;  %2263 = vmatprep.subr.bf16.mxu1 %v2707_v5 }
 0x556   :  { %2233 = vmatpush1.bf16.msra.mxu0 %v2711_v8  ;;  %2265 = vmatpush1.bf16.msra.mxu1 %v2713_v9 }
 0x557   :  { %2235 = vmatprep.subr.bf16.mxu0 %v2724_v21  ;;  %2267 = vmatprep.subr.bf16.mxu1 %v2726_v22 }
 0x55a   :  { %2237 = vmatpush1.bf16.msra.mxu0 %v2730_v25  ;;  %2269 = vmatpush1.bf16.msra.mxu1 %v2732_v28 }
 0x55b   :  { %2239 = vmatprep.subr.bf16.mxu0 %v2743_v38  ;;  %2271 = vmatprep.subr.bf16.mxu1 %v2745_v39 }
 0x55e   :  { %2241 = vmatpush1.bf16.msra.mxu0 %v2749_v44  ;;  %2273 = vmatpush1.bf16.msra.mxu1 %v2751_v47 }
 0x55f   :  { %2243 = vmatprep.subr.bf16.mxu0 %v2762_v57  ;;  %2275 = vmatprep.subr.bf16.mxu1 %v2764_v60 }
 0x562   :  { %2245 = vmatpush1.bf16.msra.mxu0 %v2768_v61  ;;  %2277 = vmatpush1.bf16.msra.mxu1 %v2770_v62 }
 0x563   :  { %2279 = vmatprep.subr.bf16.mxu0 %v2629_v10  ;;  %2311 = vmatprep.subr.bf16.mxu1 %v2633_v14 }
 0x618   :  { %v1315_v56 = vpop.f32.mrb[10].mxu0  ;;  %v1386_v63 = vpop.f32.mrb[10].mxu1 }
 0x619   :  { %v2352_v0 = vadd.f32 %v1315_v56, %v2823_v7  ;;  %v1317_v2 = vpop.f32.mrb[11].mxu0  ;;  %v1388_v13 = vpop.f32.mrb[11].mxu1  ;;  %v2368_v20 = vadd.f32 %v1386_v63, %v2829_v33 }
 0x61a   :  { %v2353_v16 = vadd.f32 %v1317_v2, %v2825_v11  ;;  %v2369_v23 = vadd.f32 %v1388_v13, %v2831_v34 }
 0x61b   :  { %v1819_v17 = vmul.f32 -1.442695, %v2352_v0  ;;  %v1821_v24 = vmul.f32 -1.442695, %v2368_v20 }
 0x61c   :  { %v1820_v19 = vmul.f32 -1.442695, %v2353_v16 }
 0x61d   :  { %2492 = vpow2.f32 %v1819_v17 }
 0x61e   :  { %2494 = vpow2.f32 %v1820_v19 }
 0x61f   :  { %2496 = vtanh.f32 %v2369_v23 }
 0x620   :  { %2498 = vpow2.f32 %v1821_v24 }
 0x627   :  { %v2493_v10 = vpop.eup %2492 }
 0x628   :  { %v1404_v29 = vadd.f32 1.0, %v2493_v10  ;;  %v2495_v14 = vpop.eup %2494 }
 0x629   :  { %v1405_v32 = vadd.f32 1.0, %v2495_v14  ;;  %v2497_v35 = vpop.eup %2496  ;;  %v1828_v14 = vld [vmem:[%s3099_s4] ss:$0 sm:$0xff] }
 0x62a   :  { %2500 = vrcp.f32 %v1404_v29  ;;  %v2499_v36 = vpop.eup %2498 }
 0x62b   :  { %2502 = vrcp.f32 %v1405_v32  ;;  %v1406_v48 = vadd.f32 1.0, %v2499_v36  ;;  %v1829_v36 = vld [vmem:[#allocation2] ss:$0 sm:$0xff] }
 0x62d   :  { %2504 = vrcp.f32 %v1406_v48 }
 0x634   :  { %v2501_v37 = vpop.eup %2500 }
 0x635   :  { %v1415_v40 = vmul.f32 %v2501_v37, %v2497_v35  ;;  %v2503_v43 = vpop.eup %2502 }
 0x636   :  { %v1414_v49 = vmul.f32 %v2503_v43, %v3003_v53 }
 0x637   :  { %v2505_v51 = vpop.eup %2504 }
 0x638   :  { %v3045_v50 = vadd.f32 %v1415_v40, %v1414_v49 }
 0x63a   :  { %2506 = vtanh.f32 %v3045_v50 }
 0x644   :  { %v2507_v52 = vpop.eup %2506 }
 0x645   :  { %v1418_v3 = vmul.f32 %v2507_v52, %v2505_v51 }
 0x647   :  { %1484 = vmatmul.mubr.f32.vlgmr.msra.gmra.mrb[12].mxu0 %v1418_v3  ;;  %1555 = vmatmul.mubr.f32.vlgmr.msra.gmra.mrb[12].mxu1 %v1418_v3 }
 0x648   :  { %2281 = vmatpush1.bf16.msra.mxu0 %v2635_v15  ;;  %2313 = vmatpush1.bf16.msra.mxu1 %v2639_v18 }
 0x649   :  { %2283 = vmatprep.subr.bf16.mxu0 %v2648_v26  ;;  %2315 = vmatprep.subr.bf16.mxu1 %v2650_v27 }
 0x64a   :  { %1653 = vmatprep.mubr.f32.mxu0 %v2567_v1  ;;  %1724 = vmatprep.mubr.f32.mxu1 %v2567_v1 }
 0x64c   :  { %2285 = vmatpush1.bf16.msra.mxu0 %v2654_v30  ;;  %2317 = vmatpush1.bf16.msra.mxu1 %v2656_v31 }
 0x64d   :  { %2287 = vmatprep.subr.bf16.mxu0 %v2667_v41  ;;  %2319 = vmatprep.subr.bf16.mxu1 %v2669_v42 }
 0x650   :  { %2289 = vmatpush1.bf16.msra.mxu0 %v2673_v45  ;;  %2321 = vmatpush1.bf16.msra.mxu1 %v2675_v46 }
 0x651   :  { %2291 = vmatprep.subr.bf16.mxu0 %v2686_v54  ;;  %2323 = vmatprep.subr.bf16.mxu1 %v2688_v55 }
 0x654   :  { %2293 = vmatpush1.bf16.msra.mxu0 %v2692_v58  ;;  %2325 = vmatpush1.bf16.msra.mxu1 %v2694_v59 }
 0x655   :  { %2295 = vmatprep.subr.bf16.mxu0 %v2705_v4  ;;  %2327 = vmatprep.subr.bf16.mxu1 %v2707_v5 }
 0x658   :  { %2297 = vmatpush1.bf16.msra.mxu0 %v2711_v8  ;;  %2329 = vmatpush1.bf16.msra.mxu1 %v2713_v9 }
 0x659   :  { %2299 = vmatprep.subr.bf16.mxu0 %v2724_v21  ;;  %2331 = vmatprep.subr.bf16.mxu1 %v2726_v22 }
 0x65c   :  { %2301 = vmatpush1.bf16.msra.mxu0 %v2730_v25  ;;  %2333 = vmatpush1.bf16.msra.mxu1 %v2732_v28 }
 0x65d   :  { %2303 = vmatprep.subr.bf16.mxu0 %v2743_v38  ;;  %2335 = vmatprep.subr.bf16.mxu1 %v2745_v39 }
 0x660   :  { %2305 = vmatpush1.bf16.msra.mxu0 %v2749_v44  ;;  %2337 = vmatpush1.bf16.msra.mxu1 %v2751_v47 }
 0x661   :  { %2307 = vmatprep.subr.bf16.mxu0 %v2762_v57  ;;  %2339 = vmatprep.subr.bf16.mxu1 %v2764_v60 }
 0x664   :  { %2309 = vmatpush1.bf16.msra.mxu0 %v2768_v61  ;;  %2341 = vmatpush1.bf16.msra.mxu1 %v2770_v62 }
 0x71a   :  { %v1485_v1 = vpop.f32.mrb[12].mxu0  ;;  %v1556_v15 = vpop.f32.mrb[12].mxu1 }
 0x71b   :  { %v2354_v18 = vadd.f32 %v1485_v1, %v2823_v7  ;;  %v1487_v26 = vpop.f32.mrb[13].mxu0  ;;  %v1558_v27 = vpop.f32.mrb[13].mxu1  ;;  %v2370_v42 = vadd.f32 %v1556_v15, %v2829_v33 }
 0x71c   :  { %v2355_v30 = vadd.f32 %v1487_v26, %v2825_v11  ;;  %v2371_v45 = vadd.f32 %v1558_v27, %v2831_v34 }
 0x71d   :  { %v1822_v31 = vmul.f32 -1.442695, %v2354_v18  ;;  %v1824_v46 = vmul.f32 -1.442695, %v2370_v42 }
 0x71e   :  { %v1823_v41 = vmul.f32 -1.442695, %v2355_v30 }
 0x71f   :  { %2508 = vpow2.f32 %v1822_v31 }
 0x720   :  { %2510 = vpow2.f32 %v1823_v41 }
 0x721   :  { %2512 = vtanh.f32 %v2371_v45 }
 0x722   :  { %2514 = vpow2.f32 %v1824_v46 }
 0x729   :  { %v2509_v54 = vpop.eup %2508 }
 0x72a   :  { %v1574_v55 = vadd.f32 1.0, %v2509_v54  ;;  %v2511_v58 = vpop.eup %2510 }
 0x72b   :  { %v1575_v59 = vadd.f32 1.0, %v2511_v58  ;;  %v2513_v4 = vpop.eup %2512 }
 0x72c   :  { %2516 = vrcp.f32 %v1574_v55  ;;  %v2515_v5 = vpop.eup %2514 }
 0x72d   :  { %2518 = vrcp.f32 %v1575_v59  ;;  %v1576_v22 = vadd.f32 1.0, %v2515_v5 }
 0x72f   :  { %2520 = vrcp.f32 %v1576_v22 }
 0x736   :  { %v2517_v8 = vpop.eup %2516 }
 0x737   :  { %v1585_v9 = vmul.f32 %v2517_v8, %v2513_v4  ;;  %v2519_v21 = vpop.eup %2518 }
 0x738   :  { %v1584_v25 = vmul.f32 %v2519_v21, %v3045_v50 }
 0x739   :  { %v2521_v38 = vpop.eup %2520 }
 0x73a   :  { %v1586_v28 = vadd.f32 %v1585_v9, %v1584_v25 }
 0x73c   :  { %2522 = vtanh.f32 %v1586_v28 }
 0x746   :  { %v2523_v39 = vpop.eup %2522 }
 0x747   :  { %v1588_v44 = vmul.f32 %v2523_v39, %v2521_v38 }
 0x749   :  { %1654 = vmatmul.mubr.f32.vlgmr.msra.gmra.mrb[14].mxu0 %v1588_v44  ;;  %1725 = vmatmul.mubr.f32.vlgmr.msra.gmra.mrb[14].mxu1 %v1588_v44 }
 0x81c   :  { %v1655_v47 = vpop.f32.mrb[14].mxu0  ;;  %v1726_v57 = vpop.f32.mrb[14].mxu1 }
 0x81d   :  { %v2356_v60 = vadd.f32 %v1655_v47, %v2823_v7  ;;  %v1657_v61 = vpop.f32.mrb[15].mxu0  ;;  %v1728_v62 = vpop.f32.mrb[15].mxu1  ;;  %v2372_v56 = vadd.f32 %v1726_v57, %v2829_v33 }
 0x81e   :  { %v2357_v53 = vadd.f32 %v1657_v61, %v2825_v11  ;;  %v2373_v63 = vadd.f32 %v1728_v62, %v2831_v34 }
 0x81f   :  { %v1825_v6 = vmul.f32 -1.442695, %v2356_v60  ;;  %v1827_v0 = vmul.f32 -1.442695, %v2372_v56 }
 0x820   :  { %v1826_v12 = vmul.f32 -1.442695, %v2357_v53 }
 0x821   :  { %2524 = vpow2.f32 %v1825_v6 }
 0x822   :  { %2526 = vpow2.f32 %v1826_v12 }
 0x823   :  { %2528 = vtanh.f32 %v2373_v63 }
 0x824   :  { %2530 = vpow2.f32 %v1827_v0 }
 0x82b   :  { %v2525_v2 = vpop.eup %2524 }
 0x82c   :  { %v1744_v13 = vadd.f32 1.0, %v2525_v2  ;;  %v2527_v16 = vpop.eup %2526 }
 0x82d   :  { %v1745_v7 = vadd.f32 1.0, %v2527_v16  ;;  %v2529_v17 = vpop.eup %2528 }
 0x82e   :  { %2532 = vrcp.f32 %v1744_v13  ;;  %v2531_v19 = vpop.eup %2530 }
 0x82f   :  { %2534 = vrcp.f32 %v1745_v7  ;;  %v1746_v24 = vadd.f32 1.0, %v2531_v19 }
 0x831   :  { %2536 = vrcp.f32 %v1746_v24 }
 0x838   :  { %v2533_v11 = vpop.eup %2532 }
 0x839   :  { %v1755_v20 = vmul.f32 %v2533_v11, %v2529_v17  ;;  %v2535_v23 = vpop.eup %2534 }
 0x83a   :  { %v1754_v10 = vmul.f32 %v2535_v23, %v1586_v28 }
 0x83b   :  { %v2537_v33 = vpop.eup %2536 }
 0x83c   :  { %v1756_v29 = vadd.f32 %v1755_v20, %v1754_v10 }
 0x83e   :  { %2538 = vtanh.f32 %v1756_v29 }
 0x848   :  { %v2539_v34 = vpop.eup %2538 }
 0x849   :  { %v1758_v32 = vmul.f32 %v2539_v34, %v2537_v33 }
 0x84b   :  { %v1766_v35 = vmul.f32 %v1828_v14, %v1758_v32 }
 0x84d   :  { %1767 = vadd.xlane.f32.xlu0 %v1766_v35 }
 0x8da   :  { %v1768_v37 = vpop.xlane.xlu0 %1767 }
 0x8db   :  { %v1776_v40 = vadd.f32 %v1829_v36, %v1768_v37 }
 0x8dd   :  { %1778 = vst.msk [vmem:[%s3101_s6] sm:$0xff] %vm1777_vm2, %v1776_v40 }
 0x8de   :  { %1783 = vsyncpa [#allocation4], 1 }

</bundles_post_ra>
